<compile_context>
chip_gen: v6e
topology: v6e:2x2x1
jax: 0.10.0
libtpu: 0.0.40
codegen_flags: <defaults>
</compile_context>

<pallas_src>
import jax
import jax.numpy as jnp
from jax import lax
from jax.experimental import pallas as pl
from jax.experimental.pallas import tpu as pltpu


def _softplus(x):
    # matches torch.nn.functional.softplus (beta=1, threshold=20)
    return jnp.where(x > 20.0, x, jnp.log1p(jnp.exp(jnp.minimum(x, 20.0))))


def _round_up(x, m):
    return ((x + m - 1) // m) * m


# ----------------------------------------------------------------- kernel ---

def _make_kernel(chans: int):
    """Fused kernel: grid = (conv layer [sequential], edge tile [reduction])."""

    def kernel(h_ref, w0_ref, b0_ref, src_ref, dst_ref, ea_ref,
               wi_ref, wj_ref, scale_ref, shift_ref,
               o_ref, x_sc, pi_sc, pj_sc, agg_sc, iota_sc):
        layer = pl.program_id(0)
        et = pl.program_id(1)
        n_tiles = pl.num_programs(1)

        te = src_ref.shape[0]
        n = x_sc.shape[0]

        # -- once per call: lin0 + softplus (f32), cache the (TE, N) iota -----
        @pl.when(jnp.logical_and(layer == 0, et == 0))
        def _once():
            x_sc[...] = _softplus(
                jnp.dot(h_ref[...], w0_ref[...],
                        preferred_element_type=jnp.float32) + b0_ref[...])
            iota_sc[...] = lax.broadcasted_iota(jnp.int32, (te, n), 1)

        # -- once per conv layer: lane-dense node projections for [f | s] -----
        @pl.when(et == 0)
        def _layer_init():
            xb = x_sc[...].astype(jnp.bfloat16)
            pi_sc[...] = jnp.dot(xb, wi_ref[0],
                                 preferred_element_type=jnp.float32
                                 ).astype(jnp.bfloat16)
            pj_sc[...] = jnp.dot(xb, wj_ref[0],
                                 preferred_element_type=jnp.float32
                                 ).astype(jnp.bfloat16)
            agg_sc[...] = jnp.zeros_like(agg_sc)

        # -- per edge tile ------------------------------------------------------
        # one-hots from int32 indices (iota read from VMEM, not regenerated);
        # padded edges carry -1 -> all-zero rows, so their (nonzero) messages
        # never reach the aggregation.
        iota = iota_sc[...]
        oh_dst = (dst_ref[...] == iota).astype(jnp.bfloat16)        # (TE, N)
        oh_src = (src_ref[...] == iota).astype(jnp.bfloat16)        # (TE, N)

        # f|s = P_i[dst] + P_j[src] + (edge_attr @ [Wf_e|Ws_e] + [bf|bs])
        fs = (jnp.dot(oh_dst, pi_sc[...], preferred_element_type=jnp.float32)
              + jnp.dot(oh_src, pj_sc[...], preferred_element_type=jnp.float32)
              + ea_ref[0].astype(jnp.float32))                      # (TE, 2C)

        msg = jax.nn.sigmoid(fs[:, :chans]) * _softplus(fs[:, chans:])  # (TE, C)

        # scatter-add (aggr='add') onto dst nodes: reuse oh_dst, contract its
        # edge axis (no second one-hot, no transposed materialisation).
        agg_sc[...] += lax.dot_general(
            oh_dst, msg.astype(jnp.bfloat16),
            dimension_numbers=(((0,), (0,)), ((), ())),
            preferred_element_type=jnp.float32)                     # (N, C)

        # -- end of layer: folded BN (eval mode) + both residuals --------------
        #    out = x + (bn(agg) + x) = 2*x + agg*scale + shift
        @pl.when(et == n_tiles - 1)
        def _layer_final():
            x_new = (2.0 * x_sc[...]
                     + agg_sc[...] * scale_ref[0] + shift_ref[0])
            x_sc[...] = x_new          # stays resident for the next layer
            o_ref[...] = x_new         # only the final layer's value is flushed

    return kernel


# ---------------------------------------------------------------- wrapper ---

def _edge_tile_and_vmem(n_edges, n_nodes, chans, max_edge_tile, vmem_budget_bytes):
    """MXU/lane-friendly edge tile (multiple of 128) sized so the per-step
    working set stays inside a v7x-safe VMEM budget; returns (te, vmem_limit)."""
    n_lanes = _round_up(max(n_nodes, 1), 128)
    # bytes per edge row: cached iota (i32) + 2 bf16 one-hots + fs/msg (f32)
    # + double-buffered idx / ea_fs input streams.
    per_edge = 8 * n_lanes + 20 * chans + 2048
    node_bytes = 16 * chans * n_nodes        # x, agg (f32) + P_i, P_j (bf16)
    te = max(128, min(max_edge_tile, _round_up(max(n_edges, 1), 128)))
    while te > 128 and te * per_edge + node_bytes > vmem_budget_bytes:
        te -= 128
    est = te * per_edge + node_bytes + (4 << 20)
    # cap at 64 MiB (v7x physical VMEM); v5e/v6e have 128 MiB but the tile is
    # already sized to the smaller budget, so the limit is never the binder.
    vmem_limit = int(min(max(2 * est, 32 << 20), 64 << 20))
    return te, vmem_limit


def interactions_forward(h, edge_index, edge_attr, params, *,
                         max_edge_tile=512, vmem_budget_bytes=24 << 20):
    """Pallas forward of _Interactions (edge_weight / data are unused upstream)."""
    h = h.astype(jnp.float32)
    n_nodes, n_hidden = h.shape
    chans = params['w0'].shape[1]
    c2 = 2 * chans
    n_conv = len(params['conv'])
    n_edges = edge_index.shape[1]

    # TODO(synk): for graphs beyond a few thousand nodes, additionally tile the
    # node dimension (extra grid axis) instead of keeping full (N, .) scratch and
    # (TE, N) one-hots resident; on v7x that node split would also feed the
    # second TensorCore (needs a cross-core exchange of x between layers).
    te, vmem_limit = _edge_tile_and_vmem(n_edges, n_nodes, chans,
                                         max_edge_tile, vmem_budget_bytes)
    e_pad = _round_up(max(n_edges, 1), te)   # n_edges == 0 -> one all-padding tile
    n_tiles = e_pad // te
    pad = e_pad - n_edges

    src = edge_index[0].astype(jnp.int32)    # x_j source
    dst = edge_index[1].astype(jnp.int32)    # x_i target / aggregation index
    if pad:
        neg = -jnp.ones((pad,), jnp.int32)   # padded edges never match any node
        src = jnp.concatenate([src, neg])
        dst = jnp.concatenate([dst, neg])
    src_c = src.reshape(e_pad, 1)
    dst_c = dst.reshape(e_pad, 1)

    edge_attr = edge_attr.astype(jnp.float32)

    # Per-layer constants stacked along a leading layer axis (picked by grid l).
    wi_l, wj_l, ea_l, sc_l, sh_l = [], [], [], [], []
    for p in params['conv']:
        wi_l.append(jnp.concatenate([p['wf_xi'], p['ws_xi']], axis=1))   # (C, 2C)
        wj_l.append(jnp.concatenate([p['wf_xj'], p['ws_xj']], axis=1))   # (C, 2C)
        we = jnp.concatenate([p['wf_e'], p['ws_e']], axis=1)             # (D, 2C)
        bfs = jnp.concatenate([p['bf'], p['bs']], axis=1)                # (1, 2C)
        # K=3 edge_attr projection kept off the MXU: done once per layer here.
        ea = edge_attr @ we + bfs                                        # (E, 2C)
        if pad:
            ea = jnp.concatenate([ea, jnp.zeros((pad, c2), jnp.float32)], axis=0)
        ea_l.append(ea)
        scale = p['gamma'] * lax.rsqrt(p['var'] + 1e-5)                  # folded BN
        sc_l.append(scale)
        sh_l.append(p['beta'] - p['mean'] * scale)

    wi_all = jnp.stack(wi_l).astype(jnp.bfloat16)        # (L, C, 2C)
    wj_all = jnp.stack(wj_l).astype(jnp.bfloat16)        # (L, C, 2C)
    ea_all = jnp.stack(ea_l).astype(jnp.bfloat16)        # (L, E_pad, 2C)
    scale_all = jnp.stack(sc_l)                          # (L, 1, C) f32
    shift_all = jnp.stack(sh_l)                          # (L, 1, C) f32

    return pl.pallas_call(
        _make_kernel(chans),
        out_shape=jax.ShapeDtypeStruct((n_nodes, chans), jnp.float32),
        grid=(n_conv, n_tiles),
        in_specs=[
            pl.BlockSpec((n_nodes, n_hidden), lambda l, e: (0, 0)),    # h
            pl.BlockSpec((n_hidden, chans),   lambda l, e: (0, 0)),    # w0
            pl.BlockSpec((1, chans),          lambda l, e: (0, 0)),    # b0
            pl.BlockSpec((te, 1),             lambda l, e: (e, 0)),    # src idx
            pl.BlockSpec((te, 1),             lambda l, e: (e, 0)),    # dst idx
            pl.BlockSpec((1, te, c2),         lambda l, e: (l, e, 0)), # ea_fs
            pl.BlockSpec((1, chans, c2),      lambda l, e: (l, 0, 0)), # [Wf_xi|Ws_xi]
            pl.BlockSpec((1, chans, c2),      lambda l, e: (l, 0, 0)), # [Wf_xj|Ws_xj]
            pl.BlockSpec((1, 1, chans),       lambda l, e: (l, 0, 0)), # BN scale
            pl.BlockSpec((1, 1, chans),       lambda l, e: (l, 0, 0)), # BN shift
        ],
        out_specs=pl.BlockSpec((n_nodes, chans), lambda l, e: (0, 0)),
        scratch_shapes=[
            pltpu.VMEM((n_nodes, chans), jnp.float32),   # x (resident across layers)
            pltpu.VMEM((n_nodes, c2), jnp.bfloat16),     # P_i = x @ [Wf_xi|Ws_xi]
            pltpu.VMEM((n_nodes, c2), jnp.bfloat16),     # P_j = x @ [Wf_xj|Ws_xj]
            pltpu.VMEM((n_nodes, chans), jnp.float32),   # agg accumulator
            pltpu.VMEM((te, n_nodes), jnp.int32),        # cached node iota
        ],
        compiler_params=pltpu.CompilerParams(
            # layer axis carries x/agg across steps, edge axis is a reduction:
            # both must run sequentially on one core.
            dimension_semantics=("arbitrary", "arbitrary"),
            vmem_limit_bytes=vmem_limit,
        ),
    )(h, params['w0'], params['b0'], src_c, dst_c,
      ea_all, wi_all, wj_all, scale_all, shift_all)


# ------------------------------------------------------- reference (JAX) ----

def interactions_reference(h, edge_index, edge_attr, params):
    out = _softplus(h @ params['w0'] + params['b0'])
    src = edge_index[0]
    dst = edge_index[1]
    for p in params['conv']:
        x_j = out[src]
        x_i = out[dst]
        f = x_i @ p['wf_xi'] + x_j @ p['wf_xj'] + edge_attr @ p['wf_e'] + p['bf']
        s = x_i @ p['ws_xi'] + x_j @ p['ws_xj'] + edge_attr @ p['ws_e'] + p['bs']
        msg = jax.nn.sigmoid(f) * _softplus(s)
        agg = jnp.zeros_like(out).at[dst].add(msg)
        bn = (agg - p['mean']) * lax.rsqrt(p['var'] + 1e-5) * p['gamma'] + p['beta']
        out = out + (bn + out)
    return out


# ------------------------------------------------------------------ setup ---

def init_params(key, node_hidden=64, chans=64, edge_dim=3, n_conv=1):
    ks = iter(jax.random.split(key, 4 + 10 * n_conv))
    params = {
        'w0': 0.1 * jax.random.normal(next(ks), (node_hidden, chans), jnp.float32),
        'b0': 0.1 * jax.random.normal(next(ks), (1, chans), jnp.float32),
        'conv': [],
    }
    for _ in range(n_conv):
        p = {
            # lin_f / lin_s weights of shape (2*chans + edge_dim, chans),
            # stored split along the concat axis: [x_i | x_j | edge_attr]
            'wf_xi': 0.1 * jax.random.normal(next(ks), (chans, chans), jnp.float32),
            'wf_xj': 0.1 * jax.random.normal(next(ks), (chans, chans), jnp.float32),
            'wf_e':  0.1 * jax.random.normal(next(ks), (edge_dim, chans), jnp.float32),
            'bf':    0.1 * jax.random.normal(next(ks), (1, chans), jnp.float32),
            'ws_xi': 0.1 * jax.random.normal(next(ks), (chans, chans), jnp.float32),
            'ws_xj': 0.1 * jax.random.normal(next(ks), (chans, chans), jnp.float32),
            'ws_e':  0.1 * jax.random.normal(next(ks), (edge_dim, chans), jnp.float32),
            'bs':    0.1 * jax.random.normal(next(ks), (1, chans), jnp.float32),
            # BatchNorm1d (eval mode) parameters / running stats
            # TODO(synk): training-mode (batch-statistics) BatchNorm not reproduced.
            'gamma': jnp.ones((1, chans), jnp.float32) * 0.9,
            'beta':  jnp.ones((1, chans), jnp.float32) * 0.05,
            'mean':  jnp.zeros((1, chans), jnp.float32),
            'var':   jnp.ones((1, chans), jnp.float32),
        }
        params['conv'].append(p)
    return params


if __name__ == "__main__":
    NODE_HIDDEN = 64
    CHANS = 64          # num_node_interaction_channels
    EDGE_DIM = 3        # num_edge_features
    N_CONV = 2          # exercise the fused multi-layer path
    N_NODES = 16
    N_EDGES = 48

    key = jax.random.PRNGKey(0)
    k_h, k_ei, k_ea, k_p = jax.random.split(key, 4)

    h = jax.random.normal(k_h, (N_NODES, NODE_HIDDEN), jnp.float32)
    edge_index = jax.random.randint(k_ei, (2, N_EDGES), 0, N_NODES, jnp.int32)
    edge_attr = jax.random.normal(k_ea, (N_EDGES, EDGE_DIM), jnp.float32)
    params = init_params(k_p, NODE_HIDDEN, CHANS, EDGE_DIM, N_CONV)

    out = interactions_forward(h, edge_index, edge_attr, params)
    out = jax.block_until_ready(out)

    ref = interactions_reference(h, edge_index, edge_attr, params)
    assert out.shape == (N_NODES, CHANS)
    # bf16 MXU operands (f32 accumulation) in the projection / gather / scatter
    # paths accumulate over 2 conv layers -> check per-element relative error.
    rel = float(jnp.max(jnp.abs(out - ref) / (jnp.abs(ref) + 1.0)))
    assert rel < 5e-2, f"mismatch vs pure-JAX reference: rel={rel}"

    print("KERNEL_OK")
</pallas_src>

<mosaic_0001>
module attributes {stable_mosaic.version = 11 : i64} {
  func.func @kernel(%arg0: i32, %arg1: i32, %arg2: memref<16x64xf32, #tpu.memory_space<vmem>>, %arg3: memref<64x64xf32, #tpu.memory_space<vmem>>, %arg4: memref<1x64xf32, #tpu.memory_space<vmem>>, %arg5: memref<128x1xi32, #tpu.memory_space<vmem>>, %arg6: memref<128x1xi32, #tpu.memory_space<vmem>>, %arg7: memref<1x128x128xbf16, #tpu.memory_space<vmem>>, %arg8: memref<1x64x128xbf16, #tpu.memory_space<vmem>>, %arg9: memref<1x64x128xbf16, #tpu.memory_space<vmem>>, %arg10: memref<1x1x64xf32, #tpu.memory_space<vmem>>, %arg11: memref<1x1x64xf32, #tpu.memory_space<vmem>>, %arg12: memref<16x64xf32, #tpu.memory_space<vmem>>, %arg13: memref<16x64xf32, #tpu.memory_space<vmem>>, %arg14: memref<16x128xbf16, #tpu.memory_space<vmem>>, %arg15: memref<16x128xbf16, #tpu.memory_space<vmem>>, %arg16: memref<16x64xf32, #tpu.memory_space<vmem>>, %arg17: memref<128x16xi32, #tpu.memory_space<vmem>>) attributes {dimension_semantics = [#tpu.dimension_semantics<arbitrary>, #tpu.dimension_semantics<arbitrary>], iteration_bounds = array<i64: 2, 1>, scalar_prefetch = 0 : i64, scratch_operands = 5 : i64, tpu.core_type = #tpu.core_type<tc>, window_params = [{pipeline_mode = #tpu.pipeline_mode<synchronous>, transform_indices = @transform_0, window_bounds = array<i64: 16, 64>}, {pipeline_mode = #tpu.pipeline_mode<synchronous>, transform_indices = @transform_1, window_bounds = array<i64: 64, 64>}, {pipeline_mode = #tpu.pipeline_mode<synchronous>, transform_indices = @transform_2, window_bounds = array<i64: 1, 64>}, {transform_indices = @transform_3, window_bounds = array<i64: 128, 1>}, {transform_indices = @transform_4, window_bounds = array<i64: 128, 1>}, {transform_indices = @transform_5, window_bounds = array<i64: 1, 128, 128>}, {transform_indices = @transform_6, window_bounds = array<i64: 1, 64, 128>}, {transform_indices = @transform_7, window_bounds = array<i64: 1, 64, 128>}, {transform_indices = @transform_8, window_bounds = array<i64: 1, 1, 64>}, {transform_indices = @transform_9, window_bounds = array<i64: 1, 1, 64>}, {pipeline_mode = #tpu.pipeline_mode<synchronous>, transform_indices = @transform_10, window_bounds = array<i64: 16, 64>}]} {
    %c0_i32 = arith.constant 0 : i32
    %0 = arith.cmpi eq, %arg0, %c0_i32 : i32
    %c0_i32_0 = arith.constant 0 : i32
    %1 = arith.cmpi eq, %arg1, %c0_i32_0 : i32
    %2 = arith.andi %0, %1 : i1
    %3 = arith.extui %2 : i1 to i32
    %c0_i32_1 = arith.constant 0 : i32
    %4 = arith.cmpi ne, %3, %c0_i32_1 : i32
    scf.if %4 {
      %c0_27 = arith.constant 0 : index
      %c0_28 = arith.constant 0 : index
      %53 = vector.load %arg2[%c0_27, %c0_28] : memref<16x64xf32, #tpu.memory_space<vmem>>, vector<16x64xf32>
      %c0_29 = arith.constant 0 : index
      %c0_30 = arith.constant 0 : index
      %54 = vector.load %arg3[%c0_29, %c0_30] : memref<64x64xf32, #tpu.memory_space<vmem>>, vector<64x64xf32>
      %cst_31 = arith.constant dense<0.000000e+00> : vector<16x64xf32>
      %55 = tpu.matmul %53, %54, %cst_31 {dimension_numbers = #tpu.dot_dimension_numbers<[1], [0], [0], [1], [0, 0, 1, 1], [], []>} : vector<16x64xf32>, vector<64x64xf32>, vector<16x64xf32> -> vector<16x64xf32>
      %c0_32 = arith.constant 0 : index
      %c0_33 = arith.constant 0 : index
      %56 = vector.load %arg4[%c0_32, %c0_33] : memref<1x64xf32, #tpu.memory_space<vmem>>, vector<1x64xf32>
      %57 = vector.broadcast %56 : vector<1x64xf32> to vector<16x64xf32>
      %58 = arith.addf %55, %57 : vector<16x64xf32>
      %cst_34 = arith.constant 2.000000e+01 : f32
      %59 = vector.broadcast %cst_34 : f32 to vector<16x64xf32>
      %60 = arith.cmpf ogt, %58, %59 : vector<16x64xf32>
      %cst_35 = arith.constant 2.000000e+01 : f32
      %61 = vector.broadcast %cst_35 : f32 to vector<16x64xf32>
      %62 = arith.minimumf %58, %61 : vector<16x64xf32>
      %63 = math.exp %62 : vector<16x64xf32>
      %64 = math.log1p %63 : vector<16x64xf32>
      %65 = arith.select %60, %58, %64 : vector<16x64xi1>, vector<16x64xf32>
      %c0_36 = arith.constant 0 : index
      %c0_37 = arith.constant 0 : index
      %66 = vector.load %arg13[%c0_36, %c0_37] : memref<16x64xf32, #tpu.memory_space<vmem>>, vector<16x64xf32>
      tpu.vector_store %arg13[%c0_36, %c0_37], %65 {strides = array<i32>} : memref<16x64xf32, #tpu.memory_space<vmem>>, vector<16x64xf32>,
      %67 = tpu.iota {dimensions = array<i32: 1>} : vector<128x16xi32>
      %c0_38 = arith.constant 0 : index
      %c0_39 = arith.constant 0 : index
      %68 = vector.load %arg17[%c0_38, %c0_39] : memref<128x16xi32, #tpu.memory_space<vmem>>, vector<128x16xi32>
      tpu.vector_store %arg17[%c0_38, %c0_39], %67 {strides = array<i32>} : memref<128x16xi32, #tpu.memory_space<vmem>>, vector<128x16xi32>,
    } else {
    }
    %c0_i32_2 = arith.constant 0 : i32
    %5 = arith.cmpi eq, %arg1, %c0_i32_2 : i32
    %6 = arith.extui %5 : i1 to i32
    %c0_i32_3 = arith.constant 0 : i32
    %7 = arith.cmpi ne, %6, %c0_i32_3 : i32
    scf.if %7 {
      %c0_27 = arith.constant 0 : index
      %c0_28 = arith.constant 0 : index
      %53 = vector.load %arg13[%c0_27, %c0_28] : memref<16x64xf32, #tpu.memory_space<vmem>>, vector<16x64xf32>
      %54 = arith.truncf %53 : vector<16x64xf32> to vector<16x64xbf16>
      %c0_29 = arith.constant 0 : index
      %c0_30 = arith.constant 0 : index
      %c0_31 = arith.constant 0 : index
      %55 = vector.load %arg8[%c0_29, %c0_30, %c0_31] : memref<1x64x128xbf16, #tpu.memory_space<vmem>>, vector<1x64x128xbf16>
      %56 = vector.shape_cast %55 : vector<1x64x128xbf16> to vector<64x128xbf16>
      %cst_32 = arith.constant dense<0.000000e+00> : vector<16x128xf32>
      %57 = tpu.matmul %54, %56, %cst_32 {dimension_numbers = #tpu.dot_dimension_numbers<[1], [0], [0], [1], [0, 0, 1, 1], [], []>} : vector<16x64xbf16>, vector<64x128xbf16>, vector<16x128xf32> -> vector<16x128xf32>
      %58 = arith.truncf %57 : vector<16x128xf32> to vector<16x128xbf16>
      %c0_33 = arith.constant 0 : index
      %c0_34 = arith.constant 0 : index
      %59 = vector.load %arg14[%c0_33, %c0_34] : memref<16x128xbf16, #tpu.memory_space<vmem>>, vector<16x128xbf16>
      tpu.vector_store %arg14[%c0_33, %c0_34], %58 {strides = array<i32>} : memref<16x128xbf16, #tpu.memory_space<vmem>>, vector<16x128xbf16>,
      %c0_35 = arith.constant 0 : index
      %c0_36 = arith.constant 0 : index
      %c0_37 = arith.constant 0 : index
      %60 = vector.load %arg9[%c0_35, %c0_36, %c0_37] : memref<1x64x128xbf16, #tpu.memory_space<vmem>>, vector<1x64x128xbf16>
      %61 = vector.shape_cast %60 : vector<1x64x128xbf16> to vector<64x128xbf16>
      %cst_38 = arith.constant dense<0.000000e+00> : vector<16x128xf32>
      %62 = tpu.matmul %54, %61, %cst_38 {dimension_numbers = #tpu.dot_dimension_numbers<[1], [0], [0], [1], [0, 0, 1, 1], [], []>} : vector<16x64xbf16>, vector<64x128xbf16>, vector<16x128xf32> -> vector<16x128xf32>
      %63 = arith.truncf %62 : vector<16x128xf32> to vector<16x128xbf16>
      %c0_39 = arith.constant 0 : index
      %c0_40 = arith.constant 0 : index
      %64 = vector.load %arg15[%c0_39, %c0_40] : memref<16x128xbf16, #tpu.memory_space<vmem>>, vector<16x128xbf16>
      tpu.vector_store %arg15[%c0_39, %c0_40], %63 {strides = array<i32>} : memref<16x128xbf16, #tpu.memory_space<vmem>>, vector<16x128xbf16>,
      %cst_41 = arith.constant 0.000000e+00 : f32
      %65 = vector.broadcast %cst_41 : f32 to vector<16x64xf32>
      %c0_42 = arith.constant 0 : index
      %c0_43 = arith.constant 0 : index
      %66 = vector.load %arg16[%c0_42, %c0_43] : memref<16x64xf32, #tpu.memory_space<vmem>>, vector<16x64xf32>
      tpu.vector_store %arg16[%c0_42, %c0_43], %65 {strides = array<i32>} : memref<16x64xf32, #tpu.memory_space<vmem>>, vector<16x64xf32>,
    } else {
    }
    %c0 = arith.constant 0 : index
    %c0_4 = arith.constant 0 : index
    %8 = vector.load %arg17[%c0, %c0_4] : memref<128x16xi32, #tpu.memory_space<vmem>>, vector<128x16xi32>
    %c0_5 = arith.constant 0 : index
    %c0_6 = arith.constant 0 : index
    %9 = vector.load %arg6[%c0_5, %c0_6] : memref<128x1xi32, #tpu.memory_space<vmem>>, vector<128x1xi32>
    %10 = vector.broadcast %9 : vector<128x1xi32> to vector<128x16xi32>
    %11 = arith.cmpi eq, %10, %8 : vector<128x16xi32>
    %12 = arith.extui %11 : vector<128x16xi1> to vector<128x16xi32>
    %13 = arith.sitofp %12 : vector<128x16xi32> to vector<128x16xf32>
    %14 = arith.truncf %13 : vector<128x16xf32> to vector<128x16xbf16>
    %c0_7 = arith.constant 0 : index
    %c0_8 = arith.constant 0 : index
    %15 = vector.load %arg5[%c0_7, %c0_8] : memref<128x1xi32, #tpu.memory_space<vmem>>, vector<128x1xi32>
    %16 = vector.broadcast %15 : vector<128x1xi32> to vector<128x16xi32>
    %17 = arith.cmpi eq, %16, %8 : vector<128x16xi32>
    %18 = arith.extui %17 : vector<128x16xi1> to vector<128x16xi32>
    %19 = arith.sitofp %18 : vector<128x16xi32> to vector<128x16xf32>
    %20 = arith.truncf %19 : vector<128x16xf32> to vector<128x16xbf16>
    %c0_9 = arith.constant 0 : index
    %c0_10 = arith.constant 0 : index
    %21 = vector.load %arg14[%c0_9, %c0_10] : memref<16x128xbf16, #tpu.memory_space<vmem>>, vector<16x128xbf16>
    %cst = arith.constant dense<0.000000e+00> : vector<128x128xf32>
    %22 = tpu.matmul %14, %21, %cst {dimension_numbers = #tpu.dot_dimension_numbers<[1], [0], [0], [1], [0, 0, 1, 1], [], []>} : vector<128x16xbf16>, vector<16x128xbf16>, vector<128x128xf32> -> vector<128x128xf32>
    %c0_11 = arith.constant 0 : index
    %c0_12 = arith.constant 0 : index
    %23 = vector.load %arg15[%c0_11, %c0_12] : memref<16x128xbf16, #tpu.memory_space<vmem>>, vector<16x128xbf16>
    %cst_13 = arith.constant dense<0.000000e+00> : vector<128x128xf32>
    %24 = tpu.matmul %20, %23, %cst_13 {dimension_numbers = #tpu.dot_dimension_numbers<[1], [0], [0], [1], [0, 0, 1, 1], [], []>} : vector<128x16xbf16>, vector<16x128xbf16>, vector<128x128xf32> -> vector<128x128xf32>
    %25 = arith.addf %22, %24 : vector<128x128xf32>
    %c0_14 = arith.constant 0 : index
    %c0_15 = arith.constant 0 : index
    %c0_16 = arith.constant 0 : index
    %26 = vector.load %arg7[%c0_14, %c0_15, %c0_16] : memref<1x128x128xbf16, #tpu.memory_space<vmem>>, vector<1x128x128xbf16>
    %27 = vector.shape_cast %26 : vector<1x128x128xbf16> to vector<128x128xbf16>
    %28 = arith.extf %27 : vector<128x128xbf16> to vector<128x128xf32>
    %29 = arith.addf %25, %28 : vector<128x128xf32>
    %30 = vector.extract_strided_slice %29 {offsets = [0, 0], sizes = [128, 64], strides = [1, 1]} : vector<128x128xf32> to vector<128x64xf32>
    %31 = arith.negf %30 : vector<128x64xf32>
    %32 = math.exp %31 : vector<128x64xf32>
    %cst_17 = arith.constant 1.000000e+00 : f32
    %33 = vector.broadcast %cst_17 : f32 to vector<128x64xf32>
    %34 = arith.addf %33, %32 : vector<128x64xf32>
    %35 = arith.divf %33, %34 : vector<128x64xf32>
    %36 = vector.extract_strided_slice %29 {offsets = [0, 64], sizes = [128, 64], strides = [1, 1]} : vector<128x128xf32> to vector<128x64xf32>
    %cst_18 = arith.constant 2.000000e+01 : f32
    %37 = vector.broadcast %cst_18 : f32 to vector<128x64xf32>
    %38 = arith.cmpf ogt, %36, %37 : vector<128x64xf32>
    %cst_19 = arith.constant 2.000000e+01 : f32
    %39 = vector.broadcast %cst_19 : f32 to vector<128x64xf32>
    %40 = arith.minimumf %36, %39 : vector<128x64xf32>
    %41 = math.exp %40 : vector<128x64xf32>
    %42 = math.log1p %41 : vector<128x64xf32>
    %43 = arith.select %38, %36, %42 : vector<128x64xi1>, vector<128x64xf32>
    %44 = arith.mulf %35, %43 : vector<128x64xf32>
    %c0_20 = arith.constant 0 : index
    %c0_21 = arith.constant 0 : index
    %45 = vector.load %arg16[%c0_20, %c0_21] : memref<16x64xf32, #tpu.memory_space<vmem>>, vector<16x64xf32>
    %46 = arith.truncf %44 : vector<128x64xf32> to vector<128x64xbf16>
    %cst_22 = arith.constant dense<0.000000e+00> : vector<16x64xf32>
    %47 = tpu.matmul %14, %46, %cst_22 {dimension_numbers = #tpu.dot_dimension_numbers<[0], [0], [1], [1], [0, 1, 1, 1], [], []>} : vector<128x16xbf16>, vector<128x64xbf16>, vector<16x64xf32> -> vector<16x64xf32>
    %48 = arith.addf %45, %47 : vector<16x64xf32>
    %c0_23 = arith.constant 0 : index
    %c0_24 = arith.constant 0 : index
    %49 = vector.load %arg16[%c0_23, %c0_24] : memref<16x64xf32, #tpu.memory_space<vmem>>, vector<16x64xf32>
    tpu.vector_store %arg16[%c0_23, %c0_24], %48 {strides = array<i32>} : memref<16x64xf32, #tpu.memory_space<vmem>>, vector<16x64xf32>,
    %c0_i32_25 = arith.constant 0 : i32
    %50 = arith.cmpi eq, %arg1, %c0_i32_25 : i32
    %51 = arith.extui %50 : i1 to i32
    %c0_i32_26 = arith.constant 0 : i32
    %52 = arith.cmpi ne, %51, %c0_i32_26 : i32
    scf.if %52 {
      %c0_27 = arith.constant 0 : index
      %c0_28 = arith.constant 0 : index
      %53 = vector.load %arg13[%c0_27, %c0_28] : memref<16x64xf32, #tpu.memory_space<vmem>>, vector<16x64xf32>
      %cst_29 = arith.constant 2.000000e+00 : f32
      %54 = vector.broadcast %cst_29 : f32 to vector<16x64xf32>
      %55 = arith.mulf %54, %53 : vector<16x64xf32>
      %c0_30 = arith.constant 0 : index
      %c0_31 = arith.constant 0 : index
      %56 = vector.load %arg16[%c0_30, %c0_31] : memref<16x64xf32, #tpu.memory_space<vmem>>, vector<16x64xf32>
      %c0_32 = arith.constant 0 : index
      %c0_33 = arith.constant 0 : index
      %c0_34 = arith.constant 0 : index
      %57 = vector.load %arg10[%c0_32, %c0_33, %c0_34] : memref<1x1x64xf32, #tpu.memory_space<vmem>>, vector<1x1x64xf32>
      %58 = vector.shape_cast %57 : vector<1x1x64xf32> to vector<1x64xf32>
      %59 = vector.broadcast %58 : vector<1x64xf32> to vector<16x64xf32>
      %60 = arith.mulf %56, %59 : vector<16x64xf32>
      %61 = arith.addf %55, %60 : vector<16x64xf32>
      %c0_35 = arith.constant 0 : index
      %c0_36 = arith.constant 0 : index
      %c0_37 = arith.constant 0 : index
      %62 = vector.load %arg11[%c0_35, %c0_36, %c0_37] : memref<1x1x64xf32, #tpu.memory_space<vmem>>, vector<1x1x64xf32>
      %63 = vector.shape_cast %62 : vector<1x1x64xf32> to vector<1x64xf32>
      %64 = vector.broadcast %63 : vector<1x64xf32> to vector<16x64xf32>
      %65 = arith.addf %61, %64 : vector<16x64xf32>
      %c0_38 = arith.constant 0 : index
      %c0_39 = arith.constant 0 : index
      %66 = vector.load %arg13[%c0_38, %c0_39] : memref<16x64xf32, #tpu.memory_space<vmem>>, vector<16x64xf32>
      tpu.vector_store %arg13[%c0_38, %c0_39], %65 {strides = array<i32>} : memref<16x64xf32, #tpu.memory_space<vmem>>, vector<16x64xf32>,
      %c0_40 = arith.constant 0 : index
      %c0_41 = arith.constant 0 : index
      %67 = vector.load %arg12[%c0_40, %c0_41] : memref<16x64xf32, #tpu.memory_space<vmem>>, vector<16x64xf32>
      tpu.vector_store %arg12[%c0_40, %c0_41], %65 {strides = array<i32>} : memref<16x64xf32, #tpu.memory_space<vmem>>, vector<16x64xf32>,
    } else {
    }
    return
  }
  func.func @transform_0(%arg0: i32, %arg1: i32) -> (i32, i32) {
    %c0_i32 = arith.constant 0 : i32
    %c0_i32_0 = arith.constant 0 : i32
    %c0_i32_1 = arith.constant 0 : i32
    return %c0_i32, %c0_i32_0 : i32, i32
  }
  func.func @transform_1(%arg0: i32, %arg1: i32) -> (i32, i32) {
    %c0_i32 = arith.constant 0 : i32
    %c0_i32_0 = arith.constant 0 : i32
    %c0_i32_1 = arith.constant 0 : i32
    return %c0_i32, %c0_i32_0 : i32, i32
  }
  func.func @transform_2(%arg0: i32, %arg1: i32) -> (i32, i32) {
    %c0_i32 = arith.constant 0 : i32
    %c0_i32_0 = arith.constant 0 : i32
    %c0_i32_1 = arith.constant 0 : i32
    return %c0_i32, %c0_i32_0 : i32, i32
  }
  func.func @transform_3(%arg0: i32, %arg1: i32) -> (i32, i32) {
    %c0_i32 = arith.constant 0 : i32
    %c0_i32_0 = arith.constant 0 : i32
    return %arg1, %c0_i32 : i32, i32
  }
  func.func @transform_4(%arg0: i32, %arg1: i32) -> (i32, i32) {
    %c0_i32 = arith.constant 0 : i32
    %c0_i32_0 = arith.constant 0 : i32
    return %arg1, %c0_i32 : i32, i32
  }
  func.func @transform_5(%arg0: i32, %arg1: i32) -> (i32, i32, i32) {
    %c0_i32 = arith.constant 0 : i32
    %c0_i32_0 = arith.constant 0 : i32
    return %arg0, %arg1, %c0_i32 : i32, i32, i32
  }
  func.func @transform_6(%arg0: i32, %arg1: i32) -> (i32, i32, i32) {
    %c0_i32 = arith.constant 0 : i32
    %c0_i32_0 = arith.constant 0 : i32
    %c0_i32_1 = arith.constant 0 : i32
    return %arg0, %c0_i32, %c0_i32_0 : i32, i32, i32
  }
  func.func @transform_7(%arg0: i32, %arg1: i32) -> (i32, i32, i32) {
    %c0_i32 = arith.constant 0 : i32
    %c0_i32_0 = arith.constant 0 : i32
    %c0_i32_1 = arith.constant 0 : i32
    return %arg0, %c0_i32, %c0_i32_0 : i32, i32, i32
  }
  func.func @transform_8(%arg0: i32, %arg1: i32) -> (i32, i32, i32) {
    %c0_i32 = arith.constant 0 : i32
    %c0_i32_0 = arith.constant 0 : i32
    %c0_i32_1 = arith.constant 0 : i32
    return %arg0, %c0_i32, %c0_i32_0 : i32, i32, i32
  }
  func.func @transform_9(%arg0: i32, %arg1: i32) -> (i32, i32, i32) {
    %c0_i32 = arith.constant 0 : i32
    %c0_i32_0 = arith.constant 0 : i32
    %c0_i32_1 = arith.constant 0 : i32
    return %arg0, %c0_i32, %c0_i32_0 : i32, i32, i32
  }
  func.func @transform_10(%arg0: i32, %arg1: i32) -> (i32, i32) {
    %c0_i32 = arith.constant 0 : i32
    %c0_i32_0 = arith.constant 0 : i32
    %c0_i32_1 = arith.constant 0 : i32
    return %c0_i32, %c0_i32_0 : i32, i32
  }
}

</mosaic_0001>

<bundles_post_ra>
// kernel: tpu_custom_call.1
= control target key start
LH: loop header
LB: loop body
LE: loop exit
PB: predicated region body
PF: predicated region fallthrough
CT: control target
= control target key end

     0   :  { %s3707_s0 = inlined_call_operand.hbm [shape: f32[16,64], index: 0, kind: input, shape index: {}]   ;;  %s3708_s1 = inlined_call_operand.vmem [shape: f32[64,64], index: 1, kind: input, shape index: {}]   ;;  %s3709_s2 = inlined_call_operand.hbm [shape: f32[1,64], index: 2, kind: input, shape index: {}]   ;;  %s3710_s3 = inlined_call_operand.vmem [shape: s32[128,1], index: 3, kind: input, shape index: {}]   ;;  %s3711_s4 = inlined_call_operand.vmem [shape: s32[128,1], index: 4, kind: input, shape index: {}]   ;;  %s3712_s5 = inlined_call_operand.vmem [shape: bf16[2,128,128], index: 5, kind: input, shape index: {}]   ;;  %s3713_s6 = inlined_call_operand.vmem [shape: bf16[2,64,128], index: 6, kind: input, shape index: {}]   ;;  %s3714_s7 = inlined_call_operand.hbm [shape: bf16[2,64,128], index: 7, kind: input, shape index: {}]   ;;  %s3715_s8 = inlined_call_operand.vmem [shape: f32[2,1,64], index: 8, kind: input, shape index: {}]   ;;  %s3716_s9 = inlined_call_operand.vmem [shape: f32[2,1,64], index: 9, kind: input, shape index: {}]   ;;  %s3717_s10 = inlined_call_operand.hbm [shape: f32[16,64], index: 10, kind: output, shape index: {}]  }
   0x1   :  { %3724 = sst [smem:[#allocation20_spill]] %s3707_s0 }
   0x2   :  { %3725 = sst [smem:[#allocation21_spill]] %s3709_s2 }
   0x3   :  { %3726 = sst [smem:[#allocation22_spill]] %s3711_s4 }
   0x4   :  { %3727 = sst [smem:[#allocation23_spill]] %s3717_s10 }
   0x5   :  { %15 = vsyncpa [#allocation8], 0 }
   0x6   :  { %16 = vsyncpa [#allocation11], 0 }
   0x7   :  { %17 = vsyncpa [#allocation9], 0  ;;  %s2886_s13 = smov 0   ;;  %s2888_s14 = smov 0  }
   0x8   :  { %s2890_s15 = smov 0   ;;  %s2892_s16 = smov 0  }
   0x9   :  { %s2894_s17 = smov 0   ;;  %s2896_s18 = smov 0  }
   0xa LB: > { %3728 = sst [smem:[#allocation18_spill]] %s2815_s18  ;;  %s2915_s19 = sadd.s32 4294967295, %s2815_s18   ;;  %s2815_s18 = sphi %s2896_s18, %s23_s18   ;;  %s2811_s17 = sphi %s2894_s17, %s3770_s17   ;;  %s2807_s16 = sphi %s2892_s16, %s3769_s16   ;;  %s2803_s15 = sphi %s2890_s15, %s3768_s15   ;;  %s2799_s14 = sphi %s2888_s14, %s3767_s14   ;;  %s2795_s13 = sphi %s2886_s13, %s3766_s13  }
   0xb   : > { %p218_p0 = scmp.ne.s32.totalorder %s2803_s15, %s2799_s14  ;;  %p219_p1 = scmp.eq.s32.totalorder %s2815_s18, 0 }
   0xc   : > { %p224_p2 = scmp.ne.s32.totalorder %s2799_s14, %s2795_s13  ;;  %p3718_p3 = scmp.eq.s32.totalorder %s2915_s19, 0 }
   0xd   : > { %p2098_p4 = scmp.ge.s32.totalorder %s2815_s18, 1  ;;  %p220_p5 = por %p219_p1, %p218_p0 }
   0xe   : > { %p308_p6 = scmp.lt.s32.totalorder %s2815_s18, 3  ;;  %p2926_p7 = por %p3718_p3, %p224_p2 }
   0xf   : > { %s2817_s22 = smov [#allocation7]   ;;  %p2435_p11 = scmp.lt.s32.totalorder %s2815_s18, 2 }
  0x10   : > { %p2930_p8 = pnand %p2098_p4, %p308_p6  ;;  %s320_s23 = sshll.u32 %s2817_s22, 4  ;;  %s321_s23 = int_to_ptr.vmem [resolvable:$true] %s320_s23 }
  0x11   : > { %p2943_p12 = pnand %p2435_p11, %p220_p5  ;;  %s2660_s26 = scalar_lea.vmem %s321_s23, 256 }
  0x12   : > { %p2422_p9 = pneg %p2930_p8  ;;  %p2661_p0 = scmp.ne.s32.totalorder %s321_s23, %s2660_s26 }
  0x13   : > { %p2668_p4 = scmp.lt.s32.totalorder %s321_s23, %s321_s23  ;;  %p2669_p6 = scmp.lt.s32.totalorder %s2660_s26, %s2660_s26 }
  0x14   : > { %p2938_p10 = pnand %p2422_p9, %p3718_p3 }
  0x15   : > { %p2670_p9 = por %p2669_p6, %p2668_p4 }
  0x16   : > { %p2651_p13 = pneg %p2938_p10 }
  0x18   : > { %p2663_p1 = pnand %p2661_p0, %p2651_p13 }
  0x1a   : > { %p2664_p2 = pneg %p2663_p1 }
  0x1c   : > { %p2671_p3 = pnand %p2670_p9, %p2664_p2 }
  0x1e   : > { %2674 = shalt.err (!%p2671_p3)
}
  0x1f   : > { %s2818_s27 = smov 128   ;;  %s2819_s28 = smov 8  }
  0x20   : > { %s3733_s0 = sld [smem:[#allocation20_spill]]  ;;  %s2820_s11 = smov [#allocation10]  }
  0x21   : > { %s337_s12 = sshll.u32 %s2820_s11, 4  ;;  %s338_s12 = int_to_ptr.vmem [resolvable:$true] %s337_s12 }
  0x22   : > { %s2686_s13 = scalar_lea.vmem %s338_s12, 16  ;;  %s2693_s22 = scalar_lea.vmem %s338_s12, 32 }
  0x23   : > { %p2687_p5 = scmp.ne.s32.totalorder %s338_s12, %s2686_s13  ;;  %p2694_p3 = scmp.lt.s32.totalorder %s338_s12, %s338_s12 }
  0x24   : > { %p2695_p1 = scmp.lt.s32.totalorder %s2693_s22, %s2686_s13 }
  0x25   : > { %p2689_p11 = pnand %p2687_p5, %p2651_p13 }
  0x26   : > { %2425 = dma.hbm_to_vmem [thread:$0]  (!%p2938_p10), %s3733_s0, 256, %s321_s23, [#allocation8], %s2818_s27, %s2818_s27, %s2819_s28  }
  0x27   : > { %p2690_p0 = pneg %p2689_p11  ;;  %p2696_p2 = por %p2695_p1, %p2694_p3 }
  0x29   : > { %p2697_p4 = pnand %p2696_p2, %p2690_p0 }
  0x2b   : > { %2700 = shalt.err (!%p2697_p4)
}
  0x2c   : > { %s3734_s2 = sld [smem:[#allocation21_spill]]  ;;  %s35_s23 = sadd.s32 1, %s2811_s17 }
  0x2d   : > { %s211_s27 = sadd.s32 1, %s2803_s15  ;;  %p37_p13 = scmp.ge.s32.totalorder %s35_s23, 2 }
  0x2e   : > { %s387_s28 = sand.u32 1, %s2815_s18   ;;  %s389_s30 = sand.u32 1, %s2803_s15  }
  0x2f   : > { %s3772_s23 = smov (%p37_p13, %s35_s23), 0  ;;  %s2104_s24 = sshll.u32 %s389_s30, 5 }
  0x30   : > { %s2205_s11 = sshll.u32 %s2811_s17, 9  ;;  %s208_s13 = ssub.s32 %s2811_s17, %s3772_s23 }
  0x31   : > { %p209_p6 = scmp.eq.s32.totalorder %s208_s13, 0  ;;  %s397_s29 = scalar_lea.hbm %s3714_s7, %s2205_s11 }
  0x32   : > { %2428 = dma.hbm_to_vmem [thread:$0]  (!%p2938_p10), %s3734_s2, 16, %s338_s12, [#allocation11]  }
  0x33   : > { %s391_s0 = scalar_lea.vmem [#allocation12], %s2104_s24  ;;  %s388_s2 = scalar_lea.sflag [#allocation8], %s387_s28 }
  0x34   : > { %s398_s10 = sshll.u32 %s391_s0, 4  ;;  %p2703_p10 = pneg %p2943_p12  ;;  %s399_s10 = int_to_ptr.vmem [resolvable:$true] %s398_s10 }
  0x35   : > { %s2978_s12 = scalar_select %p209_p6, %s2803_s15, %s211_s27  }
  0x36   : > { %s2714_s18 = scalar_lea.vmem %s399_s10, 512  ;;  %s2821_s30 = smov [#allocation12]  }
  0x37   : > { %p2715_p9 = scmp.ne.s32.totalorder %s399_s10, %s2714_s18  ;;  %s2719_s4 = sshll.u32 %s2821_s30, 4  ;;  %s2720_s4 = int_to_ptr.vmem [resolvable:$false] %s2719_s4 }
  0x38   : > { %s2721_s13 = scalar_lea.vmem %s2720_s4, 1024  ;;  %p2722_p0 = scmp.lt.s32.totalorder %s399_s10, %s2720_s4 }
  0x39   : > { %p2717_p5 = pnand %p2715_p9, %p2703_p10  ;;  %p2723_p3 = scmp.lt.s32.totalorder %s2721_s13, %s2714_s18 }
  0x3b   : > { %p2718_p11 = pneg %p2717_p5  ;;  %p2724_p1 = por %p2723_p3, %p2722_p0 }
  0x3d   : > { %p2725_p2 = pnand %p2724_p1, %p2718_p11 }
  0x3f   : > { %2728 = shalt.err (!%p2725_p2)
}
  0x40   : > { %s2822_s0 = smov 64   ;;  %s2823_s27 = smov 4  }
  0x41   : > { %2432 = dma.hbm_to_vmem [thread:$0]  (!%p2943_p12), %s397_s29, 512, %s399_s10, %s388_s2, %s2822_s0, %s2822_s0, %s2823_s27  }
  0x42   : > { %422 = sbr.rel (%p2930_p8) target bundleno = 1202 (0x4b2), region = 60 }
  0x47   : > { %p3735_p4 = scmp.eq.s32.totalorder %s2915_s19, 0 }
  0x49   : > { %2778 = dma.done.wait (%p3735_p4), [#allocation8], 256   ;;  %p3736_p13 = pmov %p3735_p4 }
  0x4a   : > { %p3737_p6 = pmov %p3735_p4 }
  0x4b   : > { %2780 = vsyncadd (%p3736_p13), [#allocation8], 4294967040 }
  0x4c   : > { %2782 = dma.done.wait (%p3737_p6), [#allocation11], 16   ;;  %p3738_p10 = pmov %p3735_p4 }
  0x4d   : > { %s432_s4 = sand.u32 1, %s2915_s19   ;;  %s434_s2 = sand.u32 1, %s2799_s14  }
  0x4e   : > { %2784 = vsyncadd (%p3738_p10), [#allocation11], 4294967280  ;;  %s2110_s10 = sshll.u32 %s434_s2, 5  ;;  %s433_s18 = scalar_lea.sflag [#allocation8], %s432_s4 }
  0x4f   : > { %s2996_s21 = scalar_lea.vmem [#allocation12], %s2110_s10 }
  0x50   : > { %2786 = dma.done.wait (%p2926_p7), %s433_s18, 512  }
  0x51   : > { %2788 = vsyncadd (%p2926_p7), %s433_s18, 4294966784  ;;  %p511_p8 = scmp.lt.s32.totalorder %s2807_s16, 1  ;;  %p532_p12 = scmp.eq.s32.totalorder %s2807_s16, 0 }
  0x52   : > { %v547_v0 = vld [vmem:[%s3708_s1 + $0x38] sm:$0xff] (%p532_p12)  ;;  %v546_v1 = vld [vmem:[%s3708_s1 + $0x30] sm:$0xff] (%p532_p12)  ;;  %vm555_vm0 = vcmask (%p532_p12), 523264   ;;  %v545_v2 = vld [vmem:[%s3708_s1 + $0x28] sm:$0xff] (%p532_p12)  ;;  %v667_v10 = vlaneseq (%p532_p12)  ;;  %vm669_vm1 = vcmask (%p532_p12), 130048  }
  0x53   : > { %s3774_s16 = smov (!%p511_p8, %s2807_s16), 1  ;;  %537 = sbr.rel (!%p532_p12) target bundleno = 335 (0x14f), region = 76  ;;  %2309 = vmatprep.subr.mxu0 (%p532_p12), %v547_v0  ;;  %v538_v3 = vld [vmem:[#allocation7] sm:$0xff] (%p532_p12)  ;;  %v544_v4 = vld [vmem:[%s3708_s1 + $0x20] sm:$0xff] (%p532_p12)  ;;  %v543_v5 = vld [vmem:[%s3708_s1 + $0x18] sm:$0xff] (%p532_p12) }
  0x54   : > { %s2206_s25 = sshll.u32 %s3774_s16, 6  ;;  %s2207_s28 = sshll.u32 %s3774_s16, 5  ;;  %2310 = vmatpush3.msra.mxu0 (%p532_p12), %v547_v0  ;;  %2325 = vmatprep.mubr.msk.f32.mxu0 (%p532_p12), %vm555_vm0, %v538_v3  ;;  %v542_v6 = vld [vmem:[%s3708_s1 + $0x10] sm:$0xff] (%p532_p12)  ;;  %v541_v7 = vld [vmem:[%s3708_s1 + $0x8] sm:$0xff] (%p532_p12)  ;;  %v540_v8 = vld [vmem:[%s3708_s1] sm:$0xff] (%p532_p12)  ;;  %v668_v11 = vand.u32 (%p532_p12), 127, %v667_v10 }
  0x55   : > { %s3012_s22 = scalar_lea.vmem %s3712_s5, %s2206_s25  ;;  %s3017_s29 = scalar_lea.vmem %s3713_s6, %s2207_s28  ;;  %2311 = vmatprep.subr.mxu0 (%p532_p12), %v546_v1  ;;  %v539_v9 = vld [vmem:[#allocation7 + $0x8] sm:$0xff] (%p532_p12)  ;;  %v2116_v12 = vld [vmem:[#allocation10] ss:$0 sm:$0xff] (%p532_p12) }
  0x56   : > { %s527_s0 = scalar_lea.vmem %s3715_s8, %s3774_s16  ;;  %s530_s2 = scalar_lea.vmem %s3716_s9, %s3774_s16  ;;  %2312 = vmatpush3.msra.mxu0 (%p532_p12), %v546_v1  ;;  %670 = vst.msk [vmem:[#allocation6] sm:$0xff] (%p532_p12), %vm669_vm1, %v668_v11  ;;  %671 = vst.msk [vmem:[#allocation6 + $0x8] sm:$0xff] (%p532_p12), %vm669_vm1, %v668_v11 }
  0x57   : > { %2313 = vmatprep.subr.mxu0 (%p532_p12), %v545_v2  ;;  %672 = vst.msk [vmem:[#allocation6 + $0x10] sm:$0xff] (%p532_p12), %vm669_vm1, %v668_v11  ;;  %673 = vst.msk [vmem:[#allocation6 + $0x18] sm:$0xff] (%p532_p12), %vm669_vm1, %v668_v11 }
  0x58   : > { %2314 = vmatpush3.msra.mxu0 %v545_v2  ;;  %674 = vst.msk [vmem:[#allocation6 + $0x20] sm:$0xff] %vm669_vm1, %v668_v11  ;;  %675 = vst.msk [vmem:[#allocation6 + $0x28] sm:$0xff] %vm669_vm1, %v668_v11 }
  0x59   : > { %2315 = vmatprep.subr.mxu0 %v544_v4  ;;  %676 = vst.msk [vmem:[#allocation6 + $0x30] sm:$0xff] %vm669_vm1, %v668_v11  ;;  %677 = vst.msk [vmem:[#allocation6 + $0x38] sm:$0xff] %vm669_vm1, %v668_v11 }
  0x5a   : > { %2316 = vmatpush3.msra.mxu0 %v544_v4  ;;  %678 = vst.msk [vmem:[#allocation6 + $0x40] sm:$0xff] %vm669_vm1, %v668_v11  ;;  %679 = vst.msk [vmem:[#allocation6 + $0x48] sm:$0xff] %vm669_vm1, %v668_v11 }
  0x5b   : > { %2317 = vmatprep.subr.mxu0 %v543_v5  ;;  %680 = vst.msk [vmem:[#allocation6 + $0x50] sm:$0xff] %vm669_vm1, %v668_v11  ;;  %681 = vst.msk [vmem:[#allocation6 + $0x58] sm:$0xff] %vm669_vm1, %v668_v11 }
  0x5c   : > { %2318 = vmatpush3.msra.mxu0 %v543_v5  ;;  %682 = vst.msk [vmem:[#allocation6 + $0x60] sm:$0xff] %vm669_vm1, %v668_v11  ;;  %683 = vst.msk [vmem:[#allocation6 + $0x68] sm:$0xff] %vm669_vm1, %v668_v11 }
  0x5d   : > { %2319 = vmatprep.subr.mxu0 %v542_v6  ;;  %684 = vst.msk [vmem:[#allocation6 + $0x70] sm:$0xff] %vm669_vm1, %v668_v11  ;;  %685 = vst.msk [vmem:[#allocation6 + $0x78] sm:$0xff] %vm669_vm1, %v668_v11 }
  0x5e   : > { %2320 = vmatpush3.msra.mxu0 %v542_v6 }
  0x5f   : > { %2321 = vmatprep.subr.mxu0 %v541_v7 }
  0x60   : > { %2322 = vmatpush3.msra.mxu0 %v541_v7 }
  0x61   : > { %2323 = vmatprep.subr.mxu0 %v540_v8 }
  0x62   : > { %2324 = vmatpush3.msra.mxu0 %v540_v8 }
  0x63   : > { %2326 = vmatmul.mubr.msk.f32.vlgmr.msra.gmra.mxu0 %vm555_vm0, %v539_v9 }
 0x123   : > { %v2327_v13 = vpop.f32.mrf.mxu0 }
 0x124   : > { %v634_v14 = vadd.f32 %v2327_v13, %v2116_v12 }
 0x125   : > { %v628_v15 = vpop.f32.mrf.mxu0 }
 0x126   : > { %v640_v16 = vmin.f32 %v634_v14, 20.0  ;;  %v629_v17 = vadd.f32 %v2116_v12, %v628_v15  ;;  %vm638_vm3 = vcmp.gt.f32.partialorder %v634_v14, 20.0 }
 0x128   : > { %v643_v18 = vmul.f32 1.442695, %v640_v16  ;;  %v639_v19 = vmin.f32 %v629_v17, 20.0  ;;  %vm637_vm5 = vcmp.gt.f32.partialorder %v629_v17, 20.0 }
 0x12a   : > { %2501 = vpow2.f32 %v643_v18  ;;  %v641_v20 = vmul.f32 1.442695, %v639_v19 }
 0x12c   : > { %2503 = vpow2.f32 %v641_v20 }
 0x137   : > { %v2502_v21 = vpop.eup %2501 }
 0x138   : > { %v654_v22 = vadd.f32 1.0, %v2502_v21  ;;  %v657_v25 = vmul.f32 -0.5, %v2502_v21  ;;  %v660_v28 = vand.u32 2147483647, %v2502_v21 }
 0x139   : > { %v2504_v23 = vpop.eup %2503 }
 0x13a   : > { %2505 = vlog2.f32 %v654_v22  ;;  %v645_v24 = vadd.f32 1.0, %v2504_v23  ;;  %v648_v26 = vmul.f32 -0.5, %v2504_v23  ;;  %v658_v27 = vadd.f32 1.0, %v657_v25 }
 0x13b   : > { %v651_v31 = vand.u32 2147483647, %v2504_v23  ;;  %vm661_vm2 = vcmp.lt.f32.partialorder %v660_v28, 0.0004427343 }
 0x13c   : > { %2507 = vlog2.f32 %v645_v24  ;;  %v649_v29 = vadd.f32 1.0, %v648_v26  ;;  %v659_v33 = vmul.f32 %v2502_v21, %v658_v27 }
 0x13d   : > { %vm652_vm4 = vcmp.lt.f32.partialorder %v651_v31, 0.0004427343 }
 0x13e   : > { %v650_v37 = vmul.f32 %v2504_v23, %v649_v29 }
 0x147   : > { %v2506_v30 = vpop.eup %2505 }
 0x148   : > { %v656_v32 = vmul.f32 0.6931472, %v2506_v30 }
 0x149   : > { %v2508_v34 = vpop.eup %2507 }
 0x14a   : > { %v662_v35 = vsel %vm661_vm2, %v659_v33, %v656_v32  ;;  %v647_v36 = vmul.f32 0.6931472, %v2508_v34 }
 0x14b   : > { %v664_v38 = vsel %vm638_vm3, %v634_v14, %v662_v35 }
 0x14c   : > { %666 = vst.msk [vmem:[#allocation2 + $0x8] sm:$0xff] %vm555_vm0, %v664_v38  ;;  %v653_v39 = vsel %vm652_vm4, %v650_v37, %v647_v36 }
 0x14d   : > { %v663_v40 = vsel %vm637_vm5, %v629_v17, %v653_v39 }
 0x14e   : > { %665 = vst.msk [vmem:[#allocation2] sm:$0xff] %vm555_vm0, %v663_v40 }
 0x14f PF: > { %v2511_v41 = vld [vmem:[%s3017_s29 + $0x18] sm:$0xff]   ;;  %v3721_v42 = vmov 0.0   ;;  %v2513_v44 = vld [vmem:[%s3017_s29 + $0x10] sm:$0xff]   ;;  %v2825_v45 = vmov 0   ;;  %vm724_vm6 = vcmask 523264   ;;  %v1000_v47 = vld [vmem:[%s3710_s3] sm:$0xff] }
 0x150   : > { %2328 = vmatprep.subr.bf16.mxu0 %v3721_v42  ;;  %2340 = vmatprep.subr.bf16.mxu1 %v3721_v42  ;;  %v2512_v43 = vld [vmem:[%s2996_s21 + $0x18] sm:$0xff]   ;;  %v2514_v46 = vld [vmem:[%s2996_s21 + $0x10] sm:$0xff]   ;;  %s3739_s30 = sld [smem:[#allocation22_spill]]  ;;  %862 = vst.msk [vmem:[#allocation5] sm:$0xff] %vm724_vm6, %v3721_v42  ;;  %863 = vst.msk [vmem:[#allocation5 + $0x8] sm:$0xff] %vm724_vm6, %v3721_v42  ;;  %vm2826_vm7 = vmmov 0  }
 0x151   : > { %2329 = vmatpush3.bf16.msra.mxu0 %v2511_v41  ;;  %2510 = vset.pattern.permute.xlu1 %v2825_v45  ;;  %v2515_v49 = vld [vmem:[%s3017_s29 + $0x8] sm:$0xff]   ;;  %v2517_v53 = vld [vmem:[%s3017_s29] sm:$0xff]   ;;  %v1003_v60 = vld [vmem:[%s3710_s3 + $0x18] sm:$0xff]  ;;  %vm1130_vm12 = vcmask 130048   ;;  %p2438_p7 = scmp.eq.s32.totalorder %s2915_s19, 1 }
 0x152   : > { %2341 = vmatpush3.bf16.msra.mxu1 %v2512_v43  ;;  %2330 = vmatprep.subr.bf16.mxu0 %v3721_v42  ;;  %v2516_v50 = vld [vmem:[%s2996_s21 + $0x8] sm:$0xff]   ;;  %v2518_v58 = vld [vmem:[%s2996_s21] sm:$0xff]   ;;  %v1007_v4 = vld [vmem:[%s3710_s3 + $0x38] sm:$0xff]  ;;  %s2828_s21 = smov [#allocation13]  }
 0x153   : > { %2342 = vmatprep.subr.bf16.mxu1 %v3721_v42  ;;  %2509 = vset.pattern.permute.xlu0 %v2825_v45  ;;  %v1001_v51 = vld [vmem:[%s3710_s3 + $0x8] sm:$0xff]  ;;  %v1002_v61 = vld [vmem:[%s3710_s3 + $0x10] sm:$0xff]  ;;  %v1004_v1 = vld [vmem:[%s3710_s3 + $0x20] sm:$0xff]  ;;  %s1938_s13 = sshll.u32 %s2828_s21, 4  ;;  %s1939_s13 = int_to_ptr.vmem [resolvable:$true] %s1938_s13 }
 0x154   : > { %1017 = vperm.xlu1 %2510, %v1000_v47   ;;  %2336 = vmatprep.mubr.msk.bf16.mxu0 %vm2826_vm7, %v3721_v42  ;;  %v690_v55 = vld [vmem:[#allocation2 + $0x8] sm:$0xff]  ;;  %v1006_v5 = vld [vmem:[%s3710_s3 + $0x30] sm:$0xff]  ;;  %v1008_v9 = vld [vmem:[%s3710_s3 + $0x40] sm:$0xff]  ;;  %s2729_s16 = scalar_lea.vmem %s1939_s13, 256  ;;  %p2736_p0 = scmp.lt.s32.totalorder %s1939_s13, %s1939_s13 }
 0x155   : > { %2331 = vmatpush3.bf16.msra.mxu0 %v2513_v44  ;;  %2348 = vmatprep.mubr.msk.bf16.mxu1 %vm2826_vm7, %v3721_v42  ;;  %v689_v54 = vld [vmem:[#allocation2] sm:$0xff]  ;;  %v1005_v0 = vld [vmem:[%s3710_s3 + $0x28] sm:$0xff]  ;;  %v1011_v12 = vld [vmem:[%s3710_s3 + $0x58] sm:$0xff]  ;;  %p2730_p9 = scmp.ne.s32.totalorder %s1939_s13, %s2729_s16  ;;  %p2737_p3 = scmp.lt.s32.totalorder %s2729_s16, %s2729_s16 }
 0x156   : > { %v880_v48 = vld [vmem:[%s3739_s30] sm:$0xff]  ;;  %2343 = vmatpush3.bf16.msra.mxu1 %v2514_v46  ;;  %2332 = vmatprep.subr.bf16.mxu0 %v3721_v42  ;;  %v881_v52 = vld [vmem:[%s3739_s30 + $0x8] sm:$0xff]  ;;  %v883_v56 = vld [vmem:[%s3739_s30 + $0x18] sm:$0xff]  ;;  %v691_v59 = vpack.c.bf16 %v690_v55, %v689_v54 }
 0x157   : > { %897 = vperm.xlu0 %2509, %v880_v48   ;;  %2344 = vmatprep.subr.bf16.mxu1 %v3721_v42  ;;  %v882_v57 = vld [vmem:[%s3739_s30 + $0x10] sm:$0xff]  ;;  %v885_v62 = vld [vmem:[%s3739_s30 + $0x28] sm:$0xff]  ;;  %v884_v63 = vld [vmem:[%s3739_s30 + $0x20] sm:$0xff]  ;;  %p2731_p5 = pnand %p2730_p9, %p2438_p7  ;;  %p2738_p1 = por %p2737_p3, %p2736_p0 }
 0x158   : > { %1020 = vperm.xlu1 %2510, %v1001_v51   ;;  %v887_v2 = vld [vmem:[%s3739_s30 + $0x38] sm:$0xff]  ;;  %v886_v3 = vld [vmem:[%s3739_s30 + $0x30] sm:$0xff]  ;;  %v889_v6 = vld [vmem:[%s3739_s30 + $0x48] sm:$0xff] }
 0x159   : > { %2333 = vmatpush3.bf16.msra.mxu0 %v2515_v49  ;;  %v888_v7 = vld [vmem:[%s3739_s30 + $0x40] sm:$0xff]  ;;  %v1009_v8 = vld [vmem:[%s3710_s3 + $0x48] sm:$0xff]  ;;  %v891_v10 = vld [vmem:[%s3739_s30 + $0x58] sm:$0xff]  ;;  %p2732_p11 = pneg %p2731_p5 }
 0x15a   : > { %2345 = vmatpush3.bf16.msra.mxu1 %v2516_v50  ;;  %2334 = vmatprep.subr.bf16.mxu0 %v3721_v42  ;;  %v890_v11 = vld [vmem:[%s3739_s30 + $0x50] sm:$0xff]  ;;  %v893_v14 = vld [vmem:[%s3739_s30 + $0x68] sm:$0xff]  ;;  %v892_v15 = vld [vmem:[%s3739_s30 + $0x60] sm:$0xff] }
 0x15b   : > { %900 = vperm.xlu0 %2509, %v881_v52   ;;  %2346 = vmatprep.subr.bf16.mxu1 %v3721_v42  ;;  %v1010_v13 = vld [vmem:[%s3710_s3 + $0x50] sm:$0xff]  ;;  %v1013_v16 = vld [vmem:[%s3710_s3 + $0x68] sm:$0xff]  ;;  %v1012_v17 = vld [vmem:[%s3710_s3 + $0x60] sm:$0xff]  ;;  %p2739_p2 = pnand %p2738_p1, %p2732_p11 }
 0x15c   : > { %906 = vperm.xlu1 %2510, %v883_v56   ;;  %v895_v18 = vld [vmem:[%s3739_s30 + $0x78] sm:$0xff]  ;;  %v894_v19 = vld [vmem:[%s3739_s30 + $0x70] sm:$0xff] }
 0x15d   : > { %2335 = vmatpush3.bf16.msra.mxu0 %v2517_v53  ;;  %v1015_v20 = vld [vmem:[%s3710_s3 + $0x78] sm:$0xff]  ;;  %v1014_v21 = vld [vmem:[%s3710_s3 + $0x70] sm:$0xff] }
 0x15e   : > { %2347 = vmatpush3.bf16.msra.mxu1 %v2518_v58  ;;  %v864_v22 = vld [vmem:[#allocation6] sm:$0xff]  ;;  %v865_v25 = vld [vmem:[#allocation6 + $0x8] sm:$0xff] }
 0x15f   : > { %903 = vperm.xlu0 %2509, %v882_v57  }
 0x160   : > { %2337 = vmatmul.mubr.msk.bf16.vlgmr.msra.gmra.mxu0 %vm724_vm6, %v691_v59  ;;  %1026 = vperm.xlu1 %2510, %v1003_v60  }
 0x161   : > { %2349 = vmatmul.mubr.msk.bf16.vlgmr.msra.gmra.mxu1 %vm724_vm6, %v691_v59 }
 0x163   : > { %1023 = vperm.xlu0 %2509, %v1002_v61  }
 0x164   : > { %912 = vperm.xlu1 %2510, %v885_v62  }
 0x167   : > { %909 = vperm.xlu0 %2509, %v884_v63   ;;  %v867_v63 = vld [vmem:[#allocation6 + $0x18] sm:$0xff] }
 0x168   : > { %1032 = vperm.xlu1 %2510, %v1005_v0   ;;  %v866_v0 = vld [vmem:[#allocation6 + $0x10] sm:$0xff] }
 0x16b   : > { %1029 = vperm.xlu0 %2509, %v1004_v1   ;;  %v869_v1 = vld [vmem:[#allocation6 + $0x28] sm:$0xff] }
 0x16c   : > { %918 = vperm.xlu1 %2510, %v887_v2   ;;  %v868_v2 = vld [vmem:[#allocation6 + $0x20] sm:$0xff] }
 0x16f   : > { %915 = vperm.xlu0 %2509, %v886_v3  }
 0x170   : > { %1038 = vperm.xlu1 %2510, %v1007_v4  }
 0x173   : > { %1035 = vperm.xlu0 %2509, %v1006_v5  }
 0x174   : > { %924 = vperm.xlu1 %2510, %v889_v6  }
 0x177   : > { %921 = vperm.xlu0 %2509, %v888_v7  }
 0x178   : > { %1044 = vperm.xlu1 %2510, %v1009_v8  }
 0x17b   : > { %1041 = vperm.xlu0 %2509, %v1008_v9  }
 0x17c   : > { %930 = vperm.xlu1 %2510, %v891_v10  }
 0x17f   : > { %927 = vperm.xlu0 %2509, %v890_v11  }
 0x180   : > { %1050 = vperm.xlu1 %2510, %v1011_v12  }
 0x183   : > { %1047 = vperm.xlu0 %2509, %v1010_v13  }
 0x184   : > { %936 = vperm.xlu1 %2510, %v893_v14  }
 0x187   : > { %933 = vperm.xlu0 %2509, %v892_v15  }
 0x188   : > { %1056 = vperm.xlu1 %2510, %v1013_v16  }
 0x18b   : > { %1053 = vperm.xlu0 %2509, %v1012_v17   ;;  %v871_v17 = vld [vmem:[#allocation6 + $0x38] sm:$0xff] }
 0x18c   : > { %942 = vperm.xlu1 %2510, %v895_v18   ;;  %v870_v18 = vld [vmem:[#allocation6 + $0x30] sm:$0xff] }
 0x18f   : > { %939 = vperm.xlu0 %2509, %v894_v19  }
 0x190   : > { %1062 = vperm.xlu1 %2510, %v1015_v20   ;;  %v873_v20 = vld [vmem:[#allocation6 + $0x48] sm:$0xff] }
 0x193   : > { %1059 = vperm.xlu0 %2509, %v1014_v21   ;;  %v872_v21 = vld [vmem:[#allocation6 + $0x40] sm:$0xff] }
 0x1cf   : > { %v1018_v23 = vpop.permute.xlu1 %1017 }
 0x1d0   : > { %vm1064_vm8 = vcmp.eq.s32.totalorder %v1018_v23, %v864_v22 }
 0x1d1   : > { %v2149_v26 = vsel %vm1064_vm8, 1.0, %v3721_v42 }
 0x1d2   : > { %v898_v24 = vpop.permute.xlu0 %897 }
 0x1d3   : > { %vm944_vm9 = vcmp.eq.s32.totalorder %v898_v24, %v864_v22  ;;  %v1021_v28 = vpop.permute.xlu1 %1020 }
 0x1d4   : > { %v2133_v27 = vsel %vm944_vm9, 1.0, %v3721_v42  ;;  %vm1065_vm10 = vcmp.eq.s32.totalorder %v1021_v28, %v865_v25 }
 0x1d5   : > { %v2150_v30 = vsel %vm1065_vm10, 1.0, %v3721_v42 }
 0x1d6   : > { %v901_v29 = vpop.permute.xlu0 %900  ;;  %v1112_v32 = vpack.c.bf16 %v2150_v30, %v2149_v26 }
 0x1d7   : > { %vm945_vm11 = vcmp.eq.s32.totalorder %v901_v29, %v865_v25  ;;  %v907_v34 = vpop.permute.xlu1 %906 }
 0x1d8   : > { %v2134_v31 = vsel %vm945_vm11, 1.0, %v3721_v42  ;;  %2354 = vmatprep.mubr.msk.bf16.mxu0 %vm1130_vm12, %v1112_v32  ;;  %vm947_vm13 = vcmp.eq.s32.totalorder %v907_v34, %v867_v63 }
 0x1d9   : > { %v3197_v33 = vpack.c.bf16 %v2134_v31, %v2133_v27  ;;  %v2136_v5 = vsel %vm947_vm13, 1.0, %v3721_v42 }
 0x1da   : > { %v904_v35 = vpop.permute.xlu0 %903 }
 0x1db   : > { %2372 = vmatprep.mubr.msk.bf16.mxu1 %vm1130_vm12, %v3197_v33  ;;  %v1027_v36 = vpop.permute.xlu1 %1026  ;;  %vm946_vm14 = vcmp.eq.s32.totalorder %v904_v35, %v866_v0 }
 0x1dc   : > { %vm1067_vm15 = vcmp.eq.s32.totalorder %v1027_v36, %v867_v63  ;;  %v2135_v7 = vsel %vm946_vm14, 1.0, %v3721_v42  ;;  %v875_v36 = vld [vmem:[#allocation6 + $0x58] sm:$0xff] }
 0x1dd   : > { %v2152_v9 = vsel %vm1067_vm15, 1.0, %v3721_v42  ;;  %v3238_v19 = vpack.c.bf16 %v2136_v5, %v2135_v7 }
 0x1de   : > { %v1024_v37 = vpop.permute.xlu0 %1023 }
 0x1df   : > { %v913_v38 = vpop.permute.xlu1 %912  ;;  %vm1066_vm0 = vcmp.eq.s32.totalorder %v1024_v37, %v866_v0  ;;  %v874_v37 = vld [vmem:[#allocation6 + $0x50] sm:$0xff] }
 0x1e0   : > { %vm949_vm1 = vcmp.eq.s32.totalorder %v913_v38, %v869_v1  ;;  %v2151_v10 = vsel %vm1066_vm0, 1.0, %v3721_v42 }
 0x1e1   : > { %v2138_v11 = vsel %vm949_vm1, 1.0, %v3721_v42  ;;  %v1113_v22 = vpack.c.bf16 %v2152_v9, %v2151_v10 }
 0x1e2   : > { %v910_v39 = vpop.permute.xlu0 %909 }
 0x1e3   : > { %v1033_v40 = vpop.permute.xlu1 %1032  ;;  %vm948_vm2 = vcmp.eq.s32.totalorder %v910_v39, %v868_v2  ;;  %v877_v39 = vld [vmem:[#allocation6 + $0x68] sm:$0xff] }
 0x1e4   : > { %vm1069_vm3 = vcmp.eq.s32.totalorder %v1033_v40, %v869_v1  ;;  %v2137_v12 = vsel %vm948_vm2, 1.0, %v3721_v42  ;;  %v876_v40 = vld [vmem:[#allocation6 + $0x60] sm:$0xff] }
 0x1e5   : > { %v2154_v15 = vsel %vm1069_vm3, 1.0, %v3721_v42  ;;  %v3240_v23 = vpack.c.bf16 %v2138_v11, %v2137_v12 }
 0x1e6   : > { %v1030_v41 = vpop.permute.xlu0 %1029 }
 0x1e7   : > { %v3202_v43 = vpop.permute.xlu1 %918  ;;  %vm1068_vm4 = vcmp.eq.s32.totalorder %v1030_v41, %v868_v2 }
 0x1e8   : > { %v2153_v16 = vsel %vm1068_vm4, 1.0, %v3721_v42  ;;  %vm951_vm5 = vcmp.eq.s32.totalorder %v3202_v43, %v871_v17 }
 0x1e9   : > { %v1114_v24 = vpack.c.bf16 %v2154_v15, %v2153_v16  ;;  %v2140_v27 = vsel %vm951_vm5, 1.0, %v3721_v42 }
 0x1ea   : > { %v3204_v44 = vpop.permute.xlu0 %915 }
 0x1eb   : > { %v3206_v45 = vpop.permute.xlu1 %1038  ;;  %vm950_vm8 = vcmp.eq.s32.totalorder %v3204_v44, %v870_v18 }
 0x1ec   : > { %vm1071_vm9 = vcmp.eq.s32.totalorder %v3206_v45, %v871_v17  ;;  %v2139_v28 = vsel %vm950_vm8, 1.0, %v3721_v42 }
 0x1ed   : > { %v2156_v29 = vsel %vm1071_vm9, 1.0, %v3721_v42  ;;  %v3265_v38 = vpack.c.bf16 %v2140_v27, %v2139_v28 }
 0x1ee   : > { %v3208_v46 = vpop.permute.xlu0 %1035 }
 0x1ef   : > { %v3210_v47 = vpop.permute.xlu1 %924  ;;  %vm1070_vm10 = vcmp.eq.s32.totalorder %v3208_v46, %v870_v18  ;;  %v3325_v18 = vld [vmem:[%s3012_s22 + $0x18] sm:$0xff]  }
 0x1f0   : > { %vm953_vm11 = vcmp.eq.s32.totalorder %v3210_v47, %v873_v20  ;;  %v2155_v30 = vsel %vm1070_vm10, 1.0, %v3721_v42 }
 0x1f1   : > { %v2142_v31 = vsel %vm953_vm11, 1.0, %v3721_v42  ;;  %v1115_v41 = vpack.c.bf16 %v2156_v29, %v2155_v30  ;;  %v2258_v29 = vld [vmem:[%s3012_s22 + $0x20] sm:$0xff]  }
 0x1f2   : > { %v3212_v48 = vpop.permute.xlu0 %921 }
 0x1f3   : > { %v3214_v49 = vpop.permute.xlu1 %1044  ;;  %vm952_vm13 = vcmp.eq.s32.totalorder %v3212_v48, %v872_v21 }
 0x1f4   : > { %vm1073_vm14 = vcmp.eq.s32.totalorder %v3214_v49, %v873_v20  ;;  %v2141_v32 = vsel %vm952_vm13, 1.0, %v3721_v42 }
 0x1f5   : > { %v2158_v34 = vsel %vm1073_vm14, 1.0, %v3721_v42  ;;  %v3267_v43 = vpack.c.bf16 %v2142_v31, %v2141_v32  ;;  %v3337_v31 = vld [vmem:[%s3012_s22 + $0x10] sm:$0xff]  }
 0x1f6   : > { %v3216_v50 = vpop.permute.xlu0 %1041 }
 0x1f7   : > { %v3218_v54 = vpop.permute.xlu1 %930  ;;  %vm1072_vm15 = vcmp.eq.s32.totalorder %v3216_v50, %v872_v21  ;;  %v2259_v21 = vld [vmem:[%s3012_s22 + $0x28] sm:$0xff]  }
 0x1f8   : > { %v2157_v35 = vsel %vm1072_vm15, 1.0, %v3721_v42  ;;  %vm955_vm0 = vcmp.eq.s32.totalorder %v3218_v54, %v875_v36  ;;  %v2245_v28 = vunpack.c.l.bf16 %v2259_v21 }
 0x1f9   : > { %v1116_v44 = vpack.c.bf16 %v2158_v34, %v2157_v35  ;;  %v2144_v47 = vsel %vm955_vm0, 1.0, %v3721_v42 }
 0x1fa   : > { %v3220_v56 = vpop.permute.xlu0 %927 }
 0x1fb   : > { %v3222_v3 = vpop.permute.xlu1 %1050  ;;  %vm954_vm1 = vcmp.eq.s32.totalorder %v3220_v56, %v874_v37  ;;  %v878_v56 = vld [vmem:[#allocation6 + $0x70] sm:$0xff] }
 0x1fc   : > { %vm1075_vm2 = vcmp.eq.s32.totalorder %v3222_v3, %v875_v36  ;;  %v2143_v48 = vsel %vm954_vm1, 1.0, %v3721_v42  ;;  %v2241_v36 = vunpack.c.l.bf16 %v2258_v29 }
 0x1fd   : > { %v2160_v49 = vsel %vm1075_vm2, 1.0, %v3721_v42 }
 0x1fe   : > { %v3224_v4 = vpop.permute.xlu0 %1047 }
 0x1ff   : > { %v3232_v13 = vpop.permute.xlu1 %936  ;;  %vm1074_vm3 = vcmp.eq.s32.totalorder %v3224_v4, %v874_v37  ;;  %v3340_v37 = vld [vmem:[%s3012_s22 + $0x8] sm:$0xff]  }
 0x200   : > { %vm957_vm4 = vcmp.eq.s32.totalorder %v3232_v13, %v877_v39  ;;  %v2159_v50 = vsel %vm1074_vm3, 1.0, %v3721_v42 }
 0x202   : > { %v3234_v14 = vpop.permute.xlu0 %933 }
 0x203   : > { %v1057_v25 = vpop.permute.xlu1 %1056  ;;  %vm956_vm5 = vcmp.eq.s32.totalorder %v3234_v14, %v876_v40 }
 0x204   : > { %vm1077_vm8 = vcmp.eq.s32.totalorder %v1057_v25, %v877_v39  ;;  %v3343_v39 = vld [vmem:[%s3012_s22] sm:$0xff]  }
 0x206   : > { %v1054_v26 = vpop.permute.xlu0 %1053 }
 0x207   : > { %v943_v45 = vpop.permute.xlu1 %942  ;;  %vm1076_vm9 = vcmp.eq.s32.totalorder %v1054_v26, %v876_v40  ;;  %v2237_v26 = vunpack.c.l.bf16 %v3325_v18 }
 0x208   : > { %v2161_v54 = vsel %vm1076_vm9, 1.0, %v3721_v42 }
 0x20a   : > { %v940_v46 = vpop.permute.xlu0 %939 }
 0x20b   : > { %vm958_vm11 = vcmp.eq.s32.totalorder %v940_v46, %v878_v56 }
 0x20c   : > { %v2147_v0 = vsel %vm958_vm11, 1.0, %v3721_v42 }
 0x220   : > { %v762_v51 = vpop.f32.mrf.mxu0 }
 0x221   : > { %v845_v52 = vpop.f32.mrf.mxu1 }
 0x222   : > { %v2338_v53 = vpop.f32.mrf.mxu0 }
 0x223   : > { %v2350_v55 = vpop.f32.mrf.mxu1  ;;  %v2162_v53 = vsel %vm1077_vm8, 1.0, %v3721_v42 }
 0x224   : > { %v765_v57 = vpop.f32.mrf.mxu0  ;;  %v879_v55 = vld [vmem:[#allocation6 + $0x78] sm:$0xff] }
 0x225   : > { %v2216_v58 = vpack.c.bf16 %v765_v57, %v762_v51  ;;  %v848_v59 = vpop.f32.mrf.mxu1  ;;  %v2146_v51 = vsel %vm957_vm4, 1.0, %v3721_v42  ;;  %v3289_v57 = vpack.c.bf16 %v2144_v47, %v2143_v48  ;;  %vm959_vm10 = vcmp.eq.s32.totalorder %v943_v45, %v879_v55 }
 0x226   : > { %v2221_v60 = vpack.c.bf16 %v848_v59, %v845_v52  ;;  %v2339_v61 = vpop.f32.mrf.mxu0  ;;  %v2145_v52 = vsel %vm956_vm5, 1.0, %v3721_v42  ;;  %v1060_v59 = vpop.permute.xlu0 %1059  ;;  %v2148_v63 = vsel %vm959_vm10, 1.0, %v3721_v42  ;;  %v2233_v47 = vunpack.c.l.bf16 %v3337_v31 }
 0x227   : > { %2217 = vst [vmem:[#allocation3] sm:$0xff] %v2216_v58   ;;  %v2351_v62 = vpop.f32.mrf.mxu1  ;;  %v1063_v58 = vpop.permute.xlu1 %1062  ;;  %v3291_v61 = vpack.c.bf16 %v2146_v51, %v2145_v52  ;;  %vm1078_vm14 = vcmp.eq.s32.totalorder %v1060_v59, %v878_v56  ;;  %v3303_v3 = vpack.c.bf16 %v2148_v63, %v2147_v0  ;;  %v2261_v52 = vld [vmem:[%s3012_s22 + $0x38] sm:$0xff]   ;;  %v2230_v59 = vunpack.c.h.bf16 %v3340_v37 }
 0x228   : > { %2222 = vst [vmem:[#allocation4] sm:$0xff] %v2221_v60   ;;  %v1117_v60 = vpack.c.bf16 %v2160_v49, %v2159_v50  ;;  %v1118_v62 = vpack.c.bf16 %v2162_v53, %v2161_v54  ;;  %vm1079_vm13 = vcmp.eq.s32.totalorder %v1063_v58, %v879_v55  ;;  %v2163_v2 = vsel %vm1078_vm14, 1.0, %v3721_v42 }
 0x229   : > { %v2164_v1 = vsel %vm1079_vm13, 1.0, %v3721_v42  ;;  %v2246_v50 = vunpack.c.h.bf16 %v2259_v21  ;;  %v2229_v53 = vunpack.c.l.bf16 %v3340_v37  ;;  %v2225_v54 = vunpack.c.l.bf16 %v3343_v39 }
 0x22a   : > { %v1119_v4 = vpack.c.bf16 %v2164_v1, %v2163_v2  ;;  %v2260_v1 = vld [vmem:[%s3012_s22 + $0x30] sm:$0xff]   ;;  %s2827_s22 = smov 64  }
 0x22e   : > { %v2520_v6 = vld [vmem:[#allocation3] sm:$0xff]  }
 0x22f   : > { %v2519_v8 = vld [vmem:[#allocation4] sm:$0xff]   ;;  %2370 = vmatprep.subr.bf16.mxu1 %v2520_v6 }
 0x230   : > { %2352 = vmatprep.subr.bf16.mxu0 %v2519_v8  ;;  %2371 = vmatpush3.bf16.msra.mxu1 %v2520_v6 }
 0x231   : > { %2353 = vmatpush3.bf16.msra.mxu0 %v2519_v8 }
 0x232   : > { %2388 = vmatprep.subr.bf16.mxu0 %v3721_v42 }
 0x233   : > { %2373 = vmatmul.mubr.msk.bf16.vlgmr.msra.gmra.mxu1 %vm1130_vm12, %v3238_v19 }
 0x234   : > { %2355 = vmatmul.mubr.msk.bf16.vlgmr.msra.gmra.mxu0 %vm1130_vm12, %v1113_v22  ;;  %2376 = vmatprep.mubr.msk.bf16.mxu1 %vm1130_vm12, %v3240_v23 }
 0x235   : > { %2358 = vmatprep.mubr.msk.bf16.mxu0 %vm1130_vm12, %v1114_v24 }
 0x23b   : > { %2377 = vmatmul.mubr.msk.bf16.gmra.mxu1 %vm1130_vm12, %v3265_v38 }
 0x23c   : > { %2359 = vmatmul.mubr.msk.bf16.gmra.mxu0 %vm1130_vm12, %v1115_v41  ;;  %2380 = vmatprep.mubr.msk.bf16.mxu1 %vm1130_vm12, %v3267_v43 }
 0x23d   : > { %2362 = vmatprep.mubr.msk.bf16.mxu0 %vm1130_vm12, %v1116_v44 }
 0x243   : > { %2381 = vmatmul.mubr.msk.bf16.gmra.mxu1 %vm1130_vm12, %v3289_v57 }
 0x244   : > { %2363 = vmatmul.mubr.msk.bf16.gmra.mxu0 %vm1130_vm12, %v1117_v60  ;;  %2384 = vmatprep.mubr.msk.bf16.mxu1 %vm1130_vm12, %v3291_v61  ;;  %v2226_v60 = vunpack.c.h.bf16 %v3343_v39  ;;  %v2250_v39 = vunpack.c.h.bf16 %v2260_v1 }
 0x245   : > { %2366 = vmatprep.mubr.msk.bf16.mxu0 %vm1130_vm12, %v1118_v62 }
 0x24b   : > { %2385 = vmatmul.mubr.msk.bf16.gmra.mxu1 %vm1130_vm12, %v3303_v3 }
 0x24c   : > { %2367 = vmatmul.mubr.msk.bf16.gmra.mxu0 %vm1130_vm12, %v1119_v4 }
 0x24d   : > { %2404 = vmatprep.mubr.msk.bf16.mxu0 %vm2826_vm7, %v3721_v42 }
 0x2f3   : > { %v2374_v5 = vpop.f32.mrf.mxu1 }
 0x2f4   : > { %v2356_v6 = vpop.f32.mrf.mxu0 }
 0x2f5   : > { %v3310_v7 = vpop.f32.mrf.mxu1 }
 0x2f6   : > { %v3312_v8 = vpop.f32.mrf.mxu0 }
 0x2f7   : > { %v3314_v9 = vpop.f32.mrf.mxu1 }
 0x2f8   : > { %v3316_v10 = vpop.f32.mrf.mxu0 }
 0x2f9   : > { %v3318_v11 = vpop.f32.mrf.mxu1 }
 0x2fa   : > { %v3320_v12 = vpop.f32.mrf.mxu0 }
 0x2fb   : > { %v2378_v13 = vpop.f32.mrf.mxu1 }
 0x2fc   : > { %v2360_v14 = vpop.f32.mrf.mxu0 }
 0x2fd   : > { %v1332_v15 = vpop.f32.mrf.mxu1  ;;  %v1341_v25 = vadd.f32 %v2378_v13, %v2360_v14  ;;  %v2242_v13 = vunpack.c.h.bf16 %v2258_v29  ;;  %v2254_v29 = vunpack.c.h.bf16 %v2261_v52 }
 0x2fe   : > { %v1205_v16 = vpop.f32.mrf.mxu0 }
 0x2ff   : > { %v3322_v17 = vpop.f32.mrf.mxu1  ;;  %v3345_v40 = vadd.f32 %v2237_v26, %v1341_v25  ;;  %v1333_v46 = vadd.f32 %v1332_v15, %v1205_v16  ;;  %v2253_v15 = vunpack.c.l.bf16 %v2261_v52  ;;  %v1325_v16 = vadd.f32 %v2374_v5, %v2356_v6 }
 0x300   : > { %v3327_v20 = vpop.f32.mrf.mxu0 }
 0x301   : > { %v3330_v22 = vpop.f32.mrf.mxu1  ;;  %v1545_v62 = vmin.f32 %v3345_v40, 20.0  ;;  %v3360_v2 = vadd.f32 %v2233_v47, %v1333_v46  ;;  %v3371_v47 = vadd.f32 %v2229_v53, %v1325_v16  ;;  %v1344_v52 = vadd.f32 %v3322_v17, %v3327_v20 }
 0x302   : > { %v3332_v24 = vpop.f32.mrf.mxu0  ;;  %vm1529_vm11 = vcmp.gt.f32.partialorder %v3345_v40, 20.0 }
 0x303   : > { %v2382_v27 = vpop.f32.mrf.mxu1  ;;  %v1543_v5 = vmin.f32 %v3360_v2, 20.0 }
 0x304   : > { %v2364_v30 = vpop.f32.mrf.mxu0 }
 0x305   : > { %v1357_v32 = vadd.f32 %v2382_v27, %v2364_v30  ;;  %v1348_v34 = vpop.f32.mrf.mxu1  ;;  %v2234_v30 = vunpack.c.h.bf16 %v3337_v31 }
 0x306   : > { %v1221_v35 = vpop.f32.mrf.mxu0 }
 0x307   : > { %v3347_v41 = vadd.f32 %v2245_v28, %v1357_v32  ;;  %v1349_v44 = vadd.f32 %v1348_v34, %v1221_v35  ;;  %v2383_v45 = vpop.f32.mrf.mxu1  ;;  %v2238_v28 = vunpack.c.h.bf16 %v3325_v18  ;;  %v2249_v34 = vunpack.c.l.bf16 %v2260_v1 }
 0x308   : > { %v2365_v48 = vpop.f32.mrf.mxu0  ;;  %v1567_v35 = vmul.f32 1.442695, %v1545_v62  ;;  %v1317_v18 = vadd.f32 %v3310_v7, %v3312_v8  ;;  %v1563_v8 = vmul.f32 1.442695, %v1543_v5 }
 0x309   : > { %3740 = vst [vmem:[#allocation19_spill] sm:$0xff] %v3347_v41  ;;  %v1549_v49 = vmin.f32 %v3347_v41, 20.0  ;;  %v1351_v51 = vpop.f32.mrf.mxu1  ;;  %v3354_v55 = vadd.f32 %v2241_v36, %v1349_v44  ;;  %v1360_v56 = vadd.f32 %v2383_v45, %v2365_v48  ;;  %vm1533_vm12 = vcmp.gt.f32.partialorder %v3347_v41, 20.0 }
 0x30a   : > { %v1224_v58 = vpop.f32.mrf.mxu0 }
 0x30b   : > { %v1575_v63 = vmul.f32 1.442695, %v1549_v49  ;;  %v2386_v0 = vpop.f32.mrf.mxu1  ;;  %v1547_v4 = vmin.f32 %v3354_v55, 20.0  ;;  %v3363_v21 = vadd.f32 %v2246_v50, %v1360_v56  ;;  %v1352_v25 = vadd.f32 %v1351_v51, %v1224_v58 }
 0x30c   : > { %v2368_v14 = vpop.f32.mrf.mxu0  ;;  %v1328_v50 = vadd.f32 %v3314_v9, %v3316_v10  ;;  %v1320_v51 = vadd.f32 %v3318_v11, %v3320_v12  ;;  %v3388_v9 = vadd.f32 %v2225_v54, %v1317_v18  ;;  %v1336_v10 = vadd.f32 %v3330_v22, %v3332_v24 }
 0x30d   : > { %v1373_v26 = vadd.f32 %v2386_v0, %v2368_v14  ;;  %v1364_v27 = vpop.f32.mrf.mxu1  ;;  %2521 = vpow2.f32 %v1575_v63  ;;  %v1550_v36 = vmin.f32 %v3363_v21, 20.0  ;;  %v1571_v6 = vmul.f32 1.442695, %v1547_v4 }
 0x30e   : > { %v1237_v32 = vpop.f32.mrf.mxu0  ;;  %v3375_v31 = vadd.f32 %v2242_v13, %v1352_v25  ;;  %2523 = vpow2.f32 %v1567_v35  ;;  %v3394_v17 = vadd.f32 %v2230_v59, %v1328_v50  ;;  %v1541_v4 = vmin.f32 %v3371_v47, 20.0 }
 0x30f   : > { %v2387_v37 = vpop.f32.mrf.mxu1  ;;  %v3369_v44 = vadd.f32 %v2253_v15, %v1373_v26  ;;  %v1365_v45 = vadd.f32 %v1364_v27, %v1237_v32  ;;  %v1577_v58 = vmul.f32 1.442695, %v1550_v36  ;;  %2525 = vpow2.f32 %v1571_v6 }
 0x310   : > { %v2369_v46 = vpop.f32.mrf.mxu0  ;;  %v1548_v11 = vmin.f32 %v3375_v31, 20.0  ;;  %v3400_v13 = vadd.f32 %v2238_v28, %v1344_v52  ;;  %v3402_v14 = vadd.f32 %v2226_v60, %v1320_v51  ;;  %v1539_v59 = vmin.f32 %v3388_v9, 20.0 }
 0x311   : > { %v1376_v48 = vadd.f32 %v2387_v37, %v2369_v46  ;;  %v1367_v49 = vpop.f32.mrf.mxu1  ;;  %v1553_v56 = vmin.f32 %v3369_v44, 20.0  ;;  %v3384_v62 = vadd.f32 %v2249_v34, %v1365_v45  ;;  %v3406_v15 = vadd.f32 %v2234_v30, %v1336_v10 }
 0x312   : > { %v1240_v53 = vpop.f32.mrf.mxu0  ;;  %v1573_v16 = vmul.f32 1.442695, %v1548_v11  ;;  %v1542_v25 = vmin.f32 %v3394_v17, 20.0  ;;  %v1546_v28 = vmin.f32 %v3400_v13, 20.0  ;;  %v1559_v32 = vmul.f32 1.442695, %v1541_v4 }
 0x313   : > { %v3386_v7 = vadd.f32 %v2254_v29, %v1376_v48  ;;  %v1583_v63 = vmul.f32 1.442695, %v1553_v56  ;;  %v1368_v0 = vadd.f32 %v1367_v49, %v1240_v53  ;;  %v1551_v12 = vmin.f32 %v3384_v62, 20.0 }
 0x314   : > { %v1540_v60 = vmin.f32 %v3402_v14, 20.0  ;;  %v1555_v35 = vmul.f32 1.442695, %v1539_v59  ;;  %v1544_v36 = vmin.f32 %v3406_v15, 20.0  ;;  %v1561_v30 = vmul.f32 1.442695, %v1542_v25 }
 0x315   : > { %2527 = vpow2.f32 %v1583_v63  ;;  %v1554_v20 = vmin.f32 %v3386_v7, 20.0  ;;  %v3397_v1 = vadd.f32 %v2250_v39, %v1368_v0  ;;  %v1579_v54 = vmul.f32 1.442695, %v1551_v12 }
 0x316   : > { %2529 = vpow2.f32 %v1577_v58  ;;  %v1569_v37 = vmul.f32 1.442695, %v1546_v28  ;;  %v1557_v39 = vmul.f32 1.442695, %v1540_v60  ;;  %v1565_v6 = vmul.f32 1.442695, %v1544_v36 }
 0x317   : > { %2531 = vpow2.f32 %v1563_v8  ;;  %v1585_v22 = vmul.f32 1.442695, %v1554_v20  ;;  %v1552_v24 = vmin.f32 %v3397_v1, 20.0  ;;  %vm1537_vm15 = vcmp.gt.f32.partialorder %v3369_v44, 20.0 }
 0x318   : > { %2533 = vpow2.f32 %v1579_v54  ;;  %vm1535_vm0 = vcmp.gt.f32.partialorder %v3384_v62, 20.0  ;;  %vm1538_vm1 = vcmp.gt.f32.partialorder %v3386_v7, 20.0  ;;  %vm1531_vm8 = vcmp.gt.f32.partialorder %v3354_v55, 20.0 }
 0x319   : > { %2535 = vpow2.f32 %v1585_v22  ;;  %v1581_v26 = vmul.f32 1.442695, %v1552_v24  ;;  %vm1536_vm9 = vcmp.gt.f32.partialorder %v3397_v1, 20.0 }
 0x31a   : > { %v2522_v27 = vpop.eup %2521 }
 0x31b   : > { %2537 = vpow2.f32 %v1581_v26  ;;  %v1677_v34 = vadd.f32 1.0, %v2522_v27  ;;  %v3412_v29 = vpop.eup %2523  ;;  %v1680_v48 = vmul.f32 -0.5, %v2522_v27  ;;  %v1683_v10 = vand.u32 2147483647, %v2522_v27 }
 0x31c   : > { %2539 = vpow2.f32 %v1573_v16  ;;  %v3414_v5 = vpop.eup %2525  ;;  %v1641_v46 = vadd.f32 1.0, %v3412_v29  ;;  %v1644_v11 = vmul.f32 -0.5, %v3412_v29 }
 0x31d   : > { %2541 = vlog2.f32 %v1677_v34  ;;  %v1659_v50 = vadd.f32 1.0, %v3414_v5  ;;  %v1681_v8 = vadd.f32 1.0, %v1680_v48  ;;  %v1662_v22 = vmul.f32 -0.5, %v3414_v5 }
 0x31e   : > { %2543 = vpow2.f32 %v1559_v32  ;;  %vm1684_vm7 = vcmp.lt.f32.partialorder %v1683_v10, 0.0004427343  ;;  %v1645_v26 = vadd.f32 1.0, %v1644_v11  ;;  %v1665_v34 = vand.u32 2147483647, %v3414_v5 }
 0x31f   : > { %2545 = vpow2.f32 %v1555_v35  ;;  %v1682_v59 = vmul.f32 %v2522_v27, %v1681_v8  ;;  %v1647_v35 = vand.u32 2147483647, %v3412_v29 }
 0x320   : > { %2547 = vpow2.f32 %v1561_v30  ;;  %vm3478_vm2 = vcmp.lt.f32.partialorder %v1665_v34, 0.0004427343 }
 0x321   : > { %2549 = vpow2.f32 %v1569_v37  ;;  %v1663_v37 = vadd.f32 1.0, %v1662_v22  ;;  %vm3484_vm3 = vcmp.lt.f32.partialorder %v1647_v35, 0.0004427343 }
 0x322   : > { %v3416_v45 = vpop.eup %2527  ;;  %2551 = vpow2.f32 %v1557_v39 }
 0x323   : > { %v3419_v18 = vpop.eup %2529  ;;  %v1713_v49 = vadd.f32 1.0, %v3416_v45  ;;  %2553 = vpow2.f32 %v1565_v6  ;;  %v1716_v16 = vmul.f32 -0.5, %v3416_v45 }
 0x324   : > { %v3423_v51 = vpop.eup %2531  ;;  %v1686_v58 = vadd.f32 1.0, %v3419_v18  ;;  %v1689_v39 = vmul.f32 -0.5, %v3419_v18  ;;  %v1692_v8 = vand.u32 2147483647, %v3419_v18 }
 0x325   : > { %v3425_v52 = vpop.eup %2533  ;;  %2555 = vlog2.f32 %v1713_v49  ;;  %v1623_v12 = vadd.f32 1.0, %v3423_v51 }
 0x326   : > { %v3427_v56 = vpop.eup %2535  ;;  %v1695_v53 = vadd.f32 1.0, %v3425_v52  ;;  %2557 = vlog2.f32 %v1641_v46  ;;  %v1698_v30 = vmul.f32 -0.5, %v3425_v52  ;;  %v1717_v46 = vadd.f32 1.0, %v1716_v16 }
 0x327   : > { %v1722_v63 = vadd.f32 1.0, %v3427_v56  ;;  %2559 = vlog2.f32 %v1659_v50  ;;  %v1725_v48 = vmul.f32 -0.5, %v3427_v56  ;;  %v1701_v10 = vand.u32 2147483647, %v3425_v52 }
 0x328   : > { %v3432_v0 = vpop.eup %2537  ;;  %2561 = vlog2.f32 %v1695_v53  ;;  %v1719_v53 = vand.u32 2147483647, %v3416_v45  ;;  %v1699_v22 = vadd.f32 1.0, %v1698_v30  ;;  %vm3501_vm10 = vcmp.lt.f32.partialorder %v1692_v8, 0.0004427343 }
 0x329   : > { %v3436_v20 = vpop.eup %2539  ;;  %2563 = vlog2.f32 %v1722_v63  ;;  %v1704_v4 = vadd.f32 1.0, %v3432_v0  ;;  %v1707_v11 = vmul.f32 -0.5, %v3432_v0  ;;  %vm3490_vm5 = vcmp.lt.f32.partialorder %v1701_v10, 0.0004427343 }
 0x32a   : > { %v2542_v54 = vpop.eup %2541  ;;  %2565 = vlog2.f32 %v1686_v58  ;;  %v1668_v28 = vadd.f32 1.0, %v3436_v20  ;;  %v3464_v58 = vmul.f32 %v3412_v29, %v1645_v26  ;;  %v3476_v29 = vmul.f32 %v3414_v5, %v1663_v37 }
 0x32b   : > { %v1679_v24 = vmul.f32 0.6931472, %v2542_v54  ;;  %2567 = vlog2.f32 %v1704_v4  ;;  %v3441_v25 = vpop.eup %2543  ;;  %vm1720_vm4 = vcmp.lt.f32.partialorder %v1719_v53, 0.0004427343  ;;  %v1728_v5 = vand.u32 2147483647, %v3427_v56 }
 0x32c   : > { %2569 = vlog2.f32 %v1623_v12  ;;  %v3444_v32 = vpop.eup %2545  ;;  %v1605_v49 = vadd.f32 1.0, %v3441_v25  ;;  %v1626_v12 = vmul.f32 -0.5, %v3423_v51  ;;  %v1700_v53 = vmul.f32 %v3425_v52, %v1699_v22 }
 0x32d   : > { %v1685_v60 = vsel %vm1684_vm7, %v1682_v59, %v1679_v24  ;;  %v3449_v27 = vpop.eup %2547  ;;  %2571 = vlog2.f32 %v1668_v28  ;;  %v1690_v59 = vadd.f32 1.0, %v1689_v39  ;;  %v1587_v34 = vadd.f32 1.0, %v3444_v32 }
 0x32e   : > { %v1741_v36 = vsel %vm1533_vm12, %v3347_v41, %v1685_v60  ;;  %v3454_v6 = vpop.eup %2549  ;;  %v1718_v60 = vmul.f32 %v3416_v45, %v1717_v46  ;;  %2573 = vlog2.f32 %v1605_v49  ;;  %v1708_v45 = vadd.f32 1.0, %v1707_v11 }
 0x32f   : > { %1783 = vrot.lane.b32.xlu0 %v1741_v36, %s2827_s22  ;;  %v3459_v50 = vpop.eup %2551  ;;  %v1650_v16 = vadd.f32 1.0, %v3454_v6  ;;  %v1726_v36 = vadd.f32 1.0, %v1725_v48  ;;  %v1627_v35 = vadd.f32 1.0, %v1626_v12  ;;  %vm1729_vm13 = vcmp.lt.f32.partialorder %v1728_v5, 0.0004427343 }
 0x330   : > { %v3467_v63 = vpop.eup %2553  ;;  %v1614_v5 = vadd.f32 1.0, %v3449_v27  ;;  %v1653_v24 = vmul.f32 -0.5, %v3454_v6  ;;  %vm1534_vm12 = vcmp.gt.f32.partialorder %v3363_v21, 20.0 }
 0x331   : > { %2575 = vlog2.f32 %v1650_v16  ;;  %v1727_v11 = vmul.f32 %v3427_v56, %v1726_v36  ;;  %v1632_v8 = vadd.f32 1.0, %v3467_v63 }
 0x332   : > { %v2556_v54 = vpop.eup %2555  ;;  %2577 = vlog2.f32 %v1587_v34 }
 0x333   : > { %v2558_v26 = vpop.eup %2557  ;;  %v1715_v28 = vmul.f32 0.6931472, %v2556_v54  ;;  %v1710_v54 = vand.u32 2147483647, %v3432_v0  ;;  %2579 = vlog2.f32 %v1632_v8  ;;  %v1654_v8 = vadd.f32 1.0, %v1653_v24 }
 0x334   : > { %v2560_v30 = vpop.eup %2559  ;;  %v1643_v22 = vmul.f32 0.6931472, %v2558_v26  ;;  %2581 = vlog2.f32 %v1614_v5 }
 0x335   : > { %v2562_v37 = vpop.eup %2561  ;;  %v1721_v39 = vsel %vm1720_vm4, %v1718_v60, %v1715_v28  ;;  %v1661_v12 = vmul.f32 0.6931472, %v2560_v30  ;;  %vm3519_vm14 = vcmp.lt.f32.partialorder %v1710_v54, 0.0004427343  ;;  %v1608_v54 = vmul.f32 -0.5, %v3441_v25 }
 0x336   : > { %v2564_v46 = vpop.eup %2563  ;;  %v1745_v48 = vsel %vm1537_vm15, %v3369_v44, %v1721_v39  ;;  %v1697_v49 = vmul.f32 0.6931472, %v2562_v37  ;;  %vm1525_vm4 = vcmp.gt.f32.partialorder %v3371_v47, 20.0 }
 0x337   : > { %v2566_v16 = vpop.eup %2565  ;;  %1791 = vrot.lane.b32.xlu0 %v1745_v48, %s2827_s22  ;;  %v1724_v28 = vmul.f32 0.6931472, %v2564_v46  ;;  %v1709_v48 = vmul.f32 %v3432_v0, %v1708_v45  ;;  %v1671_v46 = vmul.f32 -0.5, %v3436_v20  ;;  %v1667_v0 = vsel %vm3478_vm2, %v3476_v29, %v1661_v12 }
 0x338   : > { %v2568_v60 = vpop.eup %2567  ;;  %v1703_v52 = vsel %vm3490_vm5, %v1700_v53, %v1697_v49  ;;  %v1688_v30 = vmul.f32 0.6931472, %v2566_v16  ;;  %v1649_v45 = vsel %vm3484_vm3, %v3464_v58, %v1643_v22  ;;  %v1691_v49 = vmul.f32 %v3419_v18, %v1690_v59 }
 0x339   : > { %v2570_v37 = vpop.eup %2569  ;;  %v1730_v39 = vsel %vm1729_vm13, %v1727_v11, %v1724_v28  ;;  %v1706_v41 = vmul.f32 0.6931472, %v2568_v60  ;;  %v1743_v56 = vsel %vm1535_vm0, %v3384_v62, %v1703_v52  ;;  %v1672_v28 = vadd.f32 1.0, %v1671_v46 }
 0x33a   : > { %v1746_v4 = vsel %vm1538_vm1, %v3386_v7, %v1730_v39  ;;  %v2572_v34 = vpop.eup %2571  ;;  %v1625_v53 = vmul.f32 0.6931472, %v2570_v37  ;;  %v1596_v29 = vadd.f32 1.0, %v3459_v50  ;;  %v1628_v58 = vmul.f32 %v3423_v51, %v1627_v35 }
 0x33b   : > { %1787 = vrot.lane.b32.xlu0 %v1743_v56, %s2827_s22  ;;  %1793 = vrot.lane.b32.xlu1 %v1746_v4, %s2827_s22  ;;  %v1712_v26 = vsel %vm3519_vm14, %v1709_v48, %v1706_v41  ;;  %v1739_v41 = vsel %vm1531_vm8, %v3354_v55, %v1667_v0  ;;  %v1674_v18 = vand.u32 2147483647, %v3436_v20  ;;  %v1694_v59 = vsel %vm3501_vm10, %v1691_v49, %v1688_v30  ;;  %v2574_v60 = vpop.eup %2573 }
 0x33c   : > { %v1744_v42 = vsel %vm1536_vm9, %v3397_v1, %v1712_v26  ;;  %v3751_v16 = vand.u32 2147483647, %v3423_v51  ;;  %v1670_v12 = vmul.f32 0.6931472, %v2572_v34  ;;  %2583 = vlog2.f32 %v1596_v29 }
 0x33d   : > { %v1737_v35 = vsel %vm1529_vm11, %v3345_v40, %v1649_v45  ;;  %v1609_v10 = vadd.f32 1.0, %v1608_v54  ;;  %v1673_v51 = vmul.f32 %v3436_v20, %v1672_v28  ;;  %v1590_v37 = vmul.f32 -0.5, %v3444_v32 }
 0x33e   : > { %vm3552_vm7 = vcmp.lt.f32.partialorder %v3751_v16, 0.0004427343  ;;  %v2576_v22 = vpop.eup %2575  ;;  %v1635_v39 = vmul.f32 -0.5, %v3467_v63  ;;  %v1742_v48 = vsel %vm1534_vm12, %v3363_v21, %v1694_v59  ;;  %vm3566_vm15 = vcmp.lt.f32.partialorder %v1674_v18, 0.0004427343 }
 0x33f   : > { %1779 = vrot.lane.b32.xlu0 %v1739_v41, %s2827_s22  ;;  %1789 = vrot.lane.b32.xlu1 %v1744_v42, %s2827_s22  ;;  %v1631_v52 = vsel %vm3552_vm7, %v1628_v58, %v1625_v53  ;;  %v1611_v56 = vand.u32 2147483647, %v3441_v25  ;;  %v1656_v4 = vand.u32 2147483647, %v3454_v6  ;;  %vm1527_vm0 = vcmp.gt.f32.partialorder %v3360_v2, 20.0  ;;  %v2578_v26 = vpop.eup %2577 }
 0x340   : > { %v1676_v20 = vsel %vm3566_vm15, %v1673_v51, %v1670_v12  ;;  %v1607_v36 = vmul.f32 0.6931472, %v2574_v60  ;;  %v1652_v0 = vmul.f32 0.6931472, %v2576_v22  ;;  %v1735_v30 = vsel %vm1527_vm0, %v3360_v2, %v1631_v52  ;;  %v2580_v41 = vpop.eup %2579 }
 0x341   : > { %vm1532_vm1 = vcmp.gt.f32.partialorder %v3375_v31, 20.0  ;;  %v1610_v5 = vmul.f32 %v3441_v25, %v1609_v10  ;;  %v1593_v34 = vand.u32 2147483647, %v3444_v32  ;;  %v1655_v45 = vmul.f32 %v3454_v6, %v1654_v8 }
 0x342   : > { %v1591_v49 = vadd.f32 1.0, %v1590_v37  ;;  %v1636_v53 = vadd.f32 1.0, %v1635_v39  ;;  %v1617_v54 = vmul.f32 -0.5, %v3449_v27  ;;  %v1740_v28 = vsel %vm1532_vm1, %v3375_v31, %v1676_v20 }
 0x343   : > { %1775 = vrot.lane.b32.xlu0 %v1737_v35, %s2827_s22  ;;  %1785 = vrot.lane.b32.xlu1 %v1742_v48, %s2827_s22  ;;  %vm3584_vm2 = vcmp.lt.f32.partialorder %v1611_v56, 0.0004427343  ;;  %vm3588_vm3 = vcmp.lt.f32.partialorder %v1656_v4, 0.0004427343  ;;  %v1638_v25 = vand.u32 2147483647, %v3467_v63  ;;  %v2582_v35 = vpop.eup %2581 }
 0x344   : > { %v1613_v6 = vsel %vm3584_vm2, %v1610_v5, %v1607_v36  ;;  %v1658_v42 = vsel %vm3588_vm3, %v1655_v45, %v1652_v0  ;;  %v1589_v58 = vmul.f32 0.6931472, %v2578_v26  ;;  %vm1530_vm5 = vcmp.gt.f32.partialorder %v3400_v13, 20.0 }
 0x345   : > { %vm3601_vm8 = vcmp.lt.f32.partialorder %v1593_v34, 0.0004427343  ;;  %v1634_v59 = vmul.f32 0.6931472, %v2580_v41  ;;  %v1592_v16 = vmul.f32 %v3444_v32, %v1591_v49  ;;  %v1637_v11 = vmul.f32 %v3467_v63, %v1636_v53 }
 0x346   : > { %v1618_v12 = vadd.f32 1.0, %v1617_v54  ;;  %v1599_v60 = vmul.f32 -0.5, %v3459_v50  ;;  %v1733_v52 = vsel %vm1525_vm4, %v3371_v47, %v1613_v6  ;;  %v1738_v10 = vsel %vm1530_vm5, %v3400_v13, %v1658_v42 }
 0x347   : > { %1771 = vrot.lane.b32.xlu0 %v1735_v30, %s2827_s22  ;;  %1781 = vrot.lane.b32.xlu1 %v1740_v28, %s2827_s22  ;;  %vm1639_vm9 = vcmp.lt.f32.partialorder %v1638_v25, 0.0004427343  ;;  %v1620_v22 = vand.u32 2147483647, %v3449_v27  ;;  %v1595_v32 = vsel %vm3601_vm8, %v1592_v16, %v1589_v58  ;;  %v1616_v63 = vmul.f32 0.6931472, %v2582_v35 }
 0x348   : > { %v1640_v51 = vsel %vm1639_vm9, %v1637_v11, %v1634_v59  ;;  %vm1523_vm10 = vcmp.gt.f32.partialorder %v3388_v9, 20.0  ;;  %vm1528_vm11 = vcmp.gt.f32.partialorder %v3406_v15, 20.0  ;;  %v1619_v37 = vmul.f32 %v3449_v27, %v1618_v12 }
 0x349   : > { %v2584_v8 = vpop.eup %2583  ;;  %v1600_v39 = vadd.f32 1.0, %v1599_v60  ;;  %v1731_v48 = vsel %vm1523_vm10, %v3388_v9, %v1595_v32  ;;  %v1736_v46 = vsel %vm1528_vm11, %v3406_v15, %v1640_v51  ;;  %vm1621_vm13 = vcmp.lt.f32.partialorder %v1620_v22, 0.0004427343 }
 0x34a   : > { %v1602_v56 = vand.u32 2147483647, %v3459_v50  ;;  %v1622_v4 = vsel %vm1621_vm13, %v1619_v37, %v1616_v63  ;;  %v1598_v20 = vmul.f32 0.6931472, %v2584_v8  ;;  %vm1526_vm14 = vcmp.gt.f32.partialorder %v3394_v17, 20.0 }
 0x34b   : > { %1767 = vrot.lane.b32.xlu0 %v1733_v52, %s2827_s22  ;;  %1777 = vrot.lane.b32.xlu1 %v1738_v10, %s2827_s22  ;;  %v1601_v36 = vmul.f32 %v3459_v50, %v1600_v39  ;;  %v1734_v27 = vsel %vm1526_vm14, %v3394_v17, %v1622_v4  ;;  %vm1524_vm12 = vcmp.gt.f32.partialorder %v3402_v14, 20.0  ;;  %v2197_v50 = vmul.f32 -1.442695, %v3369_v44 }
 0x34c   : > { %vm1603_vm7 = vcmp.lt.f32.partialorder %v1602_v56, 0.0004427343  ;;  %v2198_v30 = vmul.f32 -1.442695, %v3386_v7  ;;  %v2188_v5 = vmul.f32 -1.442695, %v3406_v15 }
 0x34d   : > { %v1604_v0 = vsel %vm1603_vm7, %v1601_v36, %v1598_v20  ;;  %2585 = vpow2.f32 %v2197_v50  ;;  %v2183_v15 = vmul.f32 -1.442695, %v3388_v9  ;;  %v2184_v54 = vmul.f32 -1.442695, %v3402_v14 }
 0x34e   : > { %v1732_v26 = vsel %vm1524_vm12, %v3402_v14, %v1604_v0  ;;  %2587 = vpow2.f32 %v2198_v30 }
 0x34f   : > { %1763 = vrot.lane.b32.xlu0 %v1731_v48, %s2827_s22  ;;  %1773 = vrot.lane.b32.xlu1 %v1736_v46, %s2827_s22 }
 0x353   : > { %1769 = vrot.lane.b32.xlu1 %v1734_v27, %s2827_s22  ;;  %v3763_v27 = vmov 0.0  }
 0x357   : > { %1765 = vrot.lane.b32.xlu1 %v1732_v26, %s2827_s22 }
 0x35a   : > { %v2586_v44 = vpop.eup %2585 }
 0x35b   : > { %v2588_v7 = vpop.eup %2587 }
 0x36d   : > { %1837 = vxpose.xlu0.c.b16.start [1/8] (narrow) %v3197_v33, 16  ;;  %v2195_v33 = vmul.f32 -1.442695, %v3384_v62  ;;  %v2190_v62 = vmul.f32 -1.442695, %v3400_v13 }
 0x36f   : > { %2589 = vpow2.f32 %v2195_v33 }
 0x371   : > { %1838 = vxpose.xlu0.c.b16.cont [2/8] (narrow) %v3238_v19, 16  ;;  %v2196_v19 = vmul.f32 -1.442695, %v3397_v1  ;;  %v2187_v1 = vmul.f32 -1.442695, %v3360_v2 }
 0x373   : > { %2591 = vpow2.f32 %v2196_v19 }
 0x375   : > { %1839 = vxpose.xlu0.c.b16.cont [3/8] (narrow) %v3240_v23, 16  ;;  %v3762_v23 = vld [vmem:[#allocation19_spill] sm:$0xff] }
 0x379   : > { %1840 = vxpose.xlu0.c.b16.cont [4/8] (narrow) %v3265_v38, 16  ;;  %v2193_v38 = vmul.f32 -1.442695, %v3762_v23 }
 0x37b   : > { %2593 = vpow2.f32 %v2193_v38 }
 0x37c   : > { %v2590_v34 = vpop.eup %2589 }
 0x37d   : > { %1841 = vxpose.xlu0.c.b16.cont [5/8] (narrow) %v3267_v43, 16  ;;  %v2194_v43 = vmul.f32 -1.442695, %v3363_v21  ;;  %v1489_v21 = vadd.f32 1.0, %v2586_v44  ;;  %v1487_v49 = vadd.f32 1.0, %v2590_v34 }
 0x37f   : > { %2595 = vpow2.f32 %v2194_v43 }
 0x380   : > { %v2592_v45 = vpop.eup %2591 }
 0x381   : > { %1842 = vxpose.xlu0.c.b16.cont [6/8] (narrow) %v3289_v57, 16  ;;  %v2191_v57 = vmul.f32 -1.442695, %v3354_v55  ;;  %v1490_v55 = vadd.f32 1.0, %v2588_v7  ;;  %v1488_v53 = vadd.f32 1.0, %v2592_v45 }
 0x383   : > { %2597 = vpow2.f32 %v2191_v57 }
 0x385   : > { %1843 = vxpose.xlu0.c.b16.cont [7/8] (narrow) %v3291_v61, 16  ;;  %v2192_v61 = vmul.f32 -1.442695, %v3375_v31  ;;  %v2185_v31 = vmul.f32 -1.442695, %v3371_v47 }
 0x387   : > { %2599 = vpow2.f32 %v2192_v61 }
 0x388   : > { %v2594_v13 = vpop.eup %2593 }
 0x389   : > { %1844 = vxpose.xlu0.c.b16.end [8/8] (narrow) %v3303_v3, 16  ;;  %v2189_v3 = vmul.f32 -1.442695, %v3345_v40  ;;  %v2186_v40 = vmul.f32 -1.442695, %v3394_v17  ;;  %v1485_v28 = vadd.f32 1.0, %v2594_v13 }
 0x38b   : > { %2601 = vpow2.f32 %v2189_v3 }
 0x38c   : > { %2603 = vpow2.f32 %v2190_v62  ;;  %v2596_v2 = vpop.eup %2595 }
 0x38d   : > { %2605 = vpow2.f32 %v2187_v1  ;;  %v1486_v47 = vadd.f32 1.0, %v2596_v2 }
 0x38e   : > { %2607 = vpow2.f32 %v2188_v5 }
 0x38f   : > { %2609 = vrcp.f32 %v1489_v21 }
 0x390   : > { %2611 = vrcp.f32 %v1490_v55  ;;  %v2598_v24 = vpop.eup %2597 }
 0x391   : > { %2613 = vpow2.f32 %v2185_v31  ;;  %v1483_v25 = vadd.f32 1.0, %v2598_v24 }
 0x392   : > { %2615 = vpow2.f32 %v2186_v40 }
 0x393   : > { %2617 = vrcp.f32 %v1487_v49 }
 0x394   : > { %2619 = vrcp.f32 %v1488_v53  ;;  %v2600_v29 = vpop.eup %2599 }
 0x395   : > { %2621 = vpow2.f32 %v2183_v15  ;;  %v1484_v6 = vadd.f32 1.0, %v2600_v29 }
 0x396   : > { %2623 = vpow2.f32 %v2184_v54 }
 0x397   : > { %2625 = vrcp.f32 %v1485_v28 }
 0x398   : > { %v2602_v41 = vpop.eup %2601  ;;  %2627 = vrcp.f32 %v1486_v47 }
 0x399   : > { %v2604_v42 = vpop.eup %2603  ;;  %v1481_v59 = vadd.f32 1.0, %v2602_v41  ;;  %2629 = vrcp.f32 %v1483_v25 }
 0x39a   : > { %v2606_v9 = vpop.eup %2605  ;;  %v1482_v16 = vadd.f32 1.0, %v2604_v42  ;;  %2631 = vrcp.f32 %v1484_v6 }
 0x39b   : > { %v2608_v18 = vpop.eup %2607  ;;  %v1479_v32 = vadd.f32 1.0, %v2606_v9  ;;  %2633 = vrcp.f32 %v1481_v59 }
 0x39c   : > { %v2610_v14 = vpop.eup %2609  ;;  %v1480_v63 = vadd.f32 1.0, %v2608_v18  ;;  %2635 = vrcp.f32 %v1482_v16 }
 0x39d   : > { %v2612_v11 = vpop.eup %2611  ;;  %2637 = vrcp.f32 %v1479_v32 }
 0x39e   : > { %v2614_v35 = vpop.eup %2613  ;;  %2639 = vrcp.f32 %v1480_v63  ;;  %v1902_v63 = vld [vmem:[#allocation2] sm:$0xff] }
 0x39f   : > { %v2616_v22 = vpop.eup %2615  ;;  %v1477_v36 = vadd.f32 1.0, %v2614_v35 }
 0x3a0   : > { %v2618_v51 = vpop.eup %2617  ;;  %v1478_v26 = vadd.f32 1.0, %v2616_v22 }
 0x3a1   : > { %v1784_v17 = vpop.permute.xlu0 %1783  ;;  %v2620_v37 = vpop.eup %2619  ;;  %2641 = vrcp.f32 %v1477_v36 }
 0x3a2   : > { %v2622_v46 = vpop.eup %2621  ;;  %2643 = vrcp.f32 %v1478_v26 }
 0x3a3   : > { %v2624_v20 = vpop.eup %2623  ;;  %v1475_v43 = vadd.f32 1.0, %v2622_v46 }
 0x3a4   : > { %v2626_v0 = vpop.eup %2625  ;;  %v1476_v61 = vadd.f32 1.0, %v2624_v20 }
 0x3a5   : > { %v2628_v30 = vpop.eup %2627  ;;  %v1821_v23 = vmul.f32 %v2626_v0, %v1784_v17  ;;  %2645 = vrcp.f32 %v1475_v43 }
 0x3a6   : > { %v2630_v57 = vpop.eup %2629  ;;  %2647 = vrcp.f32 %v1476_v61 }
 0x3a7   : > { %v2632_v44 = vpop.eup %2631 }
 0x3a8   : > { %v2634_v21 = vpop.eup %2633 }
 0x3a9   : > { %v1792_v58 = vpop.permute.xlu0 %1791  ;;  %v2636_v55 = vpop.eup %2635 }
 0x3aa   : > { %v1825_v52 = vmul.f32 %v2610_v14, %v1792_v58  ;;  %v2638_v49 = vpop.eup %2637 }
 0x3ab   : > { %v2640_v53 = vpop.eup %2639 }
 0x3ad   : > { %v1788_v12 = vpop.permute.xlu0 %1787  ;;  %v1794_v60 = vpop.permute.xlu1 %1793 }
 0x3ae   : > { %v1826_v10 = vmul.f32 %v2612_v11, %v1794_v60  ;;  %v1823_v56 = vmul.f32 %v2618_v51, %v1788_v12  ;;  %v2642_v24 = vpop.eup %2641  ;;  %v1827_v12 = vld [vmem:[#allocation5] sm:$0xff] }
 0x3af   : > { %v2644_v29 = vpop.eup %2643 }
 0x3b0   : > { %v1836_v8 = vpack.c.bf16 %v1826_v10, %v1825_v52  ;;  %v1828_v10 = vld [vmem:[#allocation5 + $0x8] sm:$0xff] }
 0x3b1   : > { %v1780_v39 = vpop.permute.xlu0 %1779  ;;  %v1790_v48 = vpop.permute.xlu1 %1789 }
 0x3b2   : > { %v1824_v4 = vmul.f32 %v2620_v37, %v1790_v48  ;;  %2389 = vmatpush3.bf16.msra.mxu0 %v1836_v8  ;;  %v1819_v7 = vmul.f32 %v2630_v57, %v1780_v39  ;;  %v2646_v42 = vpop.eup %2645  ;;  %v2199_v8 = vld [vmem:[%s527_s0] ss:$0 sm:$0xff]  ;;  %v1904_v37 = vmul.f32 2.0, %v1902_v63  ;;  %v1903_v39 = vld [vmem:[#allocation2 + $0x8] sm:$0xff] }
 0x3b3   : > { %2390 = vmatprep.subr.bf16.mxu0 %v3763_v27  ;;  %v2648_v9 = vpop.eup %2647 }
 0x3b4   : > { %v1835_v50 = vpack.c.bf16 %v1824_v4, %v1823_v56  ;;  %v2200_v56 = vld [vmem:[%s530_s2] ss:$0 sm:$0xff]  ;;  %v1905_v4 = vmul.f32 2.0, %v1903_v39 }
 0x3b5   : > { %v1776_v33 = vpop.permute.xlu0 %1775  ;;  %v1786_v19 = vpop.permute.xlu1 %1785 }
 0x3b6   : > { %v1822_v38 = vmul.f32 %v2628_v30, %v1786_v19  ;;  %2391 = vmatpush3.bf16.msra.mxu0 %v1835_v50  ;;  %v1817_v31 = vmul.f32 %v2634_v21, %v1776_v33 }
 0x3b7   : > { %2392 = vmatprep.subr.bf16.mxu0 %v3763_v27 }
 0x3b8   : > { %v1834_v3 = vpack.c.bf16 %v1822_v38, %v1821_v23 }
 0x3b9   : > { %v1782_v62 = vpop.permute.xlu1 %1781  ;;  %v1772_v5 = vpop.permute.xlu0 %1771 }
 0x3ba   : > { %v1820_v1 = vmul.f32 %v2632_v44, %v1782_v62  ;;  %2393 = vmatpush3.bf16.msra.mxu0 %v1834_v3  ;;  %v1815_v54 = vmul.f32 %v2638_v49, %v1772_v5 }
 0x3bb   : > { %2394 = vmatprep.subr.bf16.mxu0 %v3763_v27 }
 0x3bc   : > { %v1833_v34 = vpack.c.bf16 %v1820_v1, %v1819_v7 }
 0x3bd   : > { %v1778_v45 = vpop.permute.xlu1 %1777  ;;  %v1768_v2 = vpop.permute.xlu0 %1767 }
 0x3be   : > { %v1818_v40 = vmul.f32 %v2636_v55, %v1778_v45  ;;  %2395 = vmatpush3.bf16.msra.mxu0 %v1833_v34  ;;  %v1813_v25 = vmul.f32 %v2642_v24, %v1768_v2 }
 0x3bf   : > { %2396 = vmatprep.subr.bf16.mxu0 %v3763_v27 }
 0x3c0   : > { %v1832_v13 = vpack.c.bf16 %v1818_v40, %v1817_v31 }
 0x3c1   : > { %v1774_v15 = vpop.permute.xlu1 %1773  ;;  %v1764_v6 = vpop.permute.xlu0 %1763 }
 0x3c2   : > { %v1816_v28 = vmul.f32 %v2640_v53, %v1774_v15  ;;  %2397 = vmatpush3.bf16.msra.mxu0 %v1832_v13  ;;  %v1811_v59 = vmul.f32 %v2646_v42, %v1764_v6 }
 0x3c3   : > { %2398 = vmatprep.subr.bf16.mxu0 %v3763_v27 }
 0x3c4   : > { %v1831_v47 = vpack.c.bf16 %v1816_v28, %v1815_v54 }
 0x3c5   : > { %v1770_v17 = vpop.permute.xlu1 %1769 }
 0x3c6   : > { %v1814_v41 = vmul.f32 %v2644_v29, %v1770_v17  ;;  %2399 = vmatpush3.bf16.msra.mxu0 %v1831_v47 }
 0x3c7   : > { %2400 = vmatprep.subr.bf16.mxu0 %v3763_v27 }
 0x3c8   : > { %v1830_v58 = vpack.c.bf16 %v1814_v41, %v1813_v25 }
 0x3c9   : > { %v1766_v18 = vpop.permute.xlu1 %1765 }
 0x3ca   : > { %v1812_v14 = vmul.f32 %v2648_v9, %v1766_v18  ;;  %2401 = vmatpush3.bf16.msra.mxu0 %v1830_v58 }
 0x3cb   : > { %2402 = vmatprep.subr.bf16.mxu0 %v3763_v27 }
 0x3cc   : > { %v1829_v16 = vpack.c.bf16 %v1812_v14, %v1811_v59 }
 0x3ce   : > { %2403 = vmatpush3.bf16.msra.mxu0 %v1829_v16 }
 0x3cf   : > { %v1845_v11 = vpop.trf.xlu0 }
 0x3d1   : > { %2405 = vmatmul.mubr.bf16.vlgmr.msra.gmra.mxu0 %v1845_v11 }
 0x491   : > { %v1887_v60 = vpop.f32.mrf.mxu0 }
 0x492   : > { %v1894_v35 = vadd.f32 %v1887_v60, %v1827_v12 }
 0x493   : > { %v2406_v52 = vpop.f32.mrf.mxu0 }
 0x494   : > { %1897 = vst.msk [vmem:[#allocation5] sm:$0xff] %vm724_vm6, %v1894_v35 }
 0x495   : > { %v1890_v22 = vpop.f32.mrf.mxu0 }
 0x496   : > { %v1895_v32 = vadd.f32 %v1890_v22, %v1828_v10 }
 0x497   : > { %v2407_v51 = vpop.f32.mrf.mxu0 }
 0x498   : > { %1898 = vst.msk [vmem:[#allocation5 + $0x8] sm:$0xff] %vm724_vm6, %v1895_v32 }
 0x49b   : > { %v1906_v48 = vld [vmem:[#allocation5] sm:$0xff] }
 0x49c   : > { %v1915_v46 = vmul.f32 %v2199_v8, %v1906_v48 }
 0x49e   : > { %v1917_v20 = vadd.f32 %v1915_v46, %v1904_v37 }
 0x49f   : > { %v1907_v36 = vld [vmem:[#allocation5 + $0x8] sm:$0xff] }
 0x4a0   : > { %v1916_v27 = vmul.f32 %v2199_v8, %v1907_v36  ;;  %v1926_v0 = vadd.f32 %v2200_v56, %v1917_v20 }
 0x4a2   : > { %v1918_v26 = vadd.f32 %v1916_v27, %v1905_v4  ;;  %1928 = vst.msk [vmem:[#allocation2] sm:$0xff] %vm724_vm6, %v1926_v0  ;;  %1930 = vst.msk [vmem:[#allocation13] sm:$0xff] %vm724_vm6, %v1926_v0 }
 0x4a4   : > { %v1927_v50 = vadd.f32 %v2200_v56, %v1918_v26 }
 0x4a6   : > { %1929 = vst.msk [vmem:[#allocation2 + $0x8] sm:$0xff] %vm724_vm6, %v1927_v50  ;;  %1931 = vst.msk [vmem:[#allocation13 + $0x8] sm:$0xff] %vm724_vm6, %v1927_v50 }
 0x4a7   : > { %2742 = shalt.err (!%p2739_p2)
}
 0x4a8   : > { %s2829_s0 = smov 128   ;;  %s2830_s2 = smov 8  }
 0x4a9   : > { %s3764_s10 = sld [smem:[#allocation23_spill]] }
 0x4af   : > { %2419 = dma.vmem_to_hbm [thread:$0]  (%p2438_p7), %s1939_s13, 256, %s3764_s10, [#allocation9], %s2829_s0, %s2829_s0, %s2830_s2  }
 0x4b0   : > { %2790 = dma.done.wait (%p2438_p7), [#allocation9], 256  }
 0x4b1   : > { %2792 = vsyncadd (%p2438_p7), [#allocation9], 4294967040 }
 0x4b2 PF: > { %s3765_s18 = sld [smem:[#allocation18_spill]]  ;;  %s3766_s13 = smov %s2799_s14 }
 0x4b3   : > { %s3767_s14 = smov %s2803_s15  ;;  %s3768_s15 = smov %s2978_s12 }
 0x4b4   : > { %s3769_s16 = smov %s2811_s17  ;;  %s3770_s17 = smov %s3772_s23 }
 0x4b8   : > { %s23_s18 = sadd.s32 1, %s3765_s18  }
 0x4b9   : > { %p20_p4 = scmp.ge.s32.totalorder %s23_s18, 4  }
 0x4bb   :  { %22 = sbr.rel (!%p20_p4) target bundleno = 10 (0xa), region = 134 }
 0x4c0   :  { %1954 = vsyncpa [#allocation8], 1 }
 0x4c1   :  { %1956 = vsyncpa [#allocation8 + $0x1], 1 }
 0x4c2   :  { %1957 = vsyncpa [#allocation11], 1 }
 0x4c3   :  { %1958 = vsyncpa [#allocation9], 1 }
 0x4c4   :  { %1960 = vsyncpa [#allocation9 + $0x1], 1 }

</bundles_post_ra>
